<compile_context>
chip_gen: v7x
topology: tpu7x:2x2x1
jax: 0.10.0
libtpu: 0.0.40
codegen_flags: <defaults>
</compile_context>

<pallas_src>
import functools
import math

import jax
import jax.numpy as jnp
from jax.experimental import pallas as pl
from jax.experimental.pallas import tpu as pltpu


def _layernorm(x, gamma, beta, eps=1e-5):
    mu = jnp.mean(x, axis=-1, keepdims=True)
    var = jnp.mean(jnp.square(x - mu), axis=-1, keepdims=True)
    return (x - mu) * jax.lax.rsqrt(var + eps) * gamma + beta


def clip_resblock_kernel(
    x_ref,
    ln1_g_ref, ln1_b_ref, w_qkv_ref, s_qkv_ref, b_qkv_ref,
    w_o_ref, s_o_ref, b_o_ref,
    ln2_g_ref, ln2_b_ref, w_fc1_ref, s_fc1_ref, b_fc1_ref,
    w_fc2_ref, s_fc2_ref, b_fc2_ref,
    lnf_g_ref, lnf_b_ref,
    out_ref,
    state_ref, attn_ref,
    *, n_heads):
    """One transformer resblock per grid step; layer axis = pl.program_id(1)."""
    l = pl.program_id(1)
    n_l = pl.num_programs(1)

    Bt, S, D = state_ref.shape
    H = n_heads
    hd = D // H

    # Load the embedded tokens into the resident residual-stream scratch once.
    @pl.when(l == 0)
    def _():
        state_ref[...] = x_ref[...].astype(jnp.float32)

    def mm(h_bf16, w_ref, s_ref, b_ref):
        # matmul + per-output-column scale (dequant and/or 1/sqrt(hd)) + bias.
        w = w_ref[0]
        if w.dtype != jnp.bfloat16:
            # int8 streamed weights: dequant handled by s_ref; just widen for MXU.
            w = w.astype(jnp.float32).astype(jnp.bfloat16)
        y = jnp.dot(h_bf16, w, preferred_element_type=jnp.float32)
        return y * s_ref[0] + b_ref[0]

    x = state_ref[...].reshape(Bt * S, D)        # [Bt*S, D] f32 residual stream

    # Causal additive mask built in-kernel (== open_clip model.attn_mask).
    # Padded key columns (if S was padded) are only reachable from padded query
    # rows, which are sliced off in the wrapper.
    row = jax.lax.broadcasted_iota(jnp.int32, (S, S), 0)
    col = jax.lax.broadcasted_iota(jnp.int32, (S, S), 1)
    mask = jnp.where(col <= row, 0.0, -jnp.inf).astype(jnp.float32)

    # --- self-attention sub-block (pre-LN residual) ---
    h = _layernorm(x, ln1_g_ref[0], ln1_b_ref[0]).astype(jnp.bfloat16)
    qkv = mm(h, w_qkv_ref, s_qkv_ref, b_qkv_ref)              # [Bt*S, 3D] f32
    qkv = qkv.astype(jnp.bfloat16).reshape(Bt, S, 3 * D)      # single bf16 cast
    for hh in range(H):   # heads only; layers are a grid axis (not unrolled)
        q_h = qkv[:, :, 0 * D + hh * hd: 0 * D + (hh + 1) * hd]
        k_h = qkv[:, :, 1 * D + hh * hd: 1 * D + (hh + 1) * hd]
        v_h = qkv[:, :, 2 * D + hh * hd: 2 * D + (hh + 1) * hd]
        # 1/sqrt(hd) was already applied (in f32) to the q output columns.
        s = jnp.einsum('bqd,bkd->bqk', q_h, k_h,
                       preferred_element_type=jnp.float32) + mask     # [Bt, S, S]
        m = jnp.max(s, axis=-1, keepdims=True)
        e = jnp.exp(s - m)
        p = (e * pl.reciprocal(jnp.sum(e, axis=-1, keepdims=True),
                               approx=True)).astype(jnp.bfloat16)
        o_h = jnp.einsum('bqk,bkd->bqd', p, v_h,
                         preferred_element_type=jnp.float32)          # [Bt, S, hd]
        attn_ref[:, :, hh * hd:(hh + 1) * hd] = o_h.astype(jnp.bfloat16)
    attn = attn_ref[...].reshape(Bt * S, D)                   # bf16, MXU-ready
    x = x + mm(attn, w_o_ref, s_o_ref, b_o_ref)

    # --- MLP sub-block (pre-LN residual) ---
    h = _layernorm(x, ln2_g_ref[0], ln2_b_ref[0]).astype(jnp.bfloat16)
    h = mm(h, w_fc1_ref, s_fc1_ref, b_fc1_ref)
    # TODO(synk): open_clip's nn.GELU is exact (erf); tanh approximation used for TPU lowering.
    h = jax.nn.gelu(h, approximate=True).astype(jnp.bfloat16)
    h = mm(h, w_fc2_ref, s_fc2_ref, b_fc2_ref)
    x = x + h

    state_ref[...] = x.reshape(Bt, S, D)

    # model.ln_final + writeback after the last resblock.
    @pl.when(l == n_l - 1)
    def _():
        y = _layernorm(x, lnf_g_ref[...], lnf_b_ref[...])
        out_ref[...] = y.reshape(Bt, S, D).astype(out_ref.dtype)


def _prep_weights(params, n_heads, weight_quant):
    """Pre-transpose (frozen) weights to [in, out], optionally quantize to int8
    with a per-output-channel dequant scale, and fold 1/sqrt(head_dim) into the
    q output columns' scale/bias (applied in f32 on the matmul output)."""
    D = params["token_embedding"].shape[1]
    hd = D // n_heads
    attn_scale = 1.0 / math.sqrt(hd)
    qscale = jnp.concatenate([jnp.full((D,), attn_scale, jnp.float32),
                              jnp.ones((2 * D,), jnp.float32)])

    def prep(w, extra_col_scale=None):
        w = jnp.swapaxes(w.astype(jnp.float32), 1, 2)        # [L, in, out]
        if weight_quant == "int8":
            amax = jnp.max(jnp.abs(w), axis=1, keepdims=True)            # [L,1,out]
            s = jnp.where(amax > 0, amax / 127.0, 1.0)
            wq = jnp.clip(jnp.round(w / s), -127, 127).astype(jnp.int8)
            scale = s
        else:
            wq = w.astype(jnp.bfloat16)
            scale = jnp.ones((w.shape[0], 1, w.shape[2]), jnp.float32)
        if extra_col_scale is not None:
            scale = scale * extra_col_scale[None, None, :]
        return wq, scale

    w_qkv, s_qkv = prep(params["w_qkv"], qscale)
    w_o,   s_o   = prep(params["w_o"])
    w_fc1, s_fc1 = prep(params["w_fc1"])
    w_fc2, s_fc2 = prep(params["w_fc2"])
    b_qkv = params["b_qkv"].astype(jnp.float32) * qscale[None, None, :]

    per_layer = [
        params["ln1_g"], params["ln1_b"],
        w_qkv, s_qkv, b_qkv,
        w_o, s_o, params["b_o"],
        params["ln2_g"], params["ln2_b"],
        w_fc1, s_fc1, params["b_fc1"],
        w_fc2, s_fc2, params["b_fc2"],
    ]
    return per_layer, params["lnf_g"], params["lnf_b"]


def frozen_openclip_embed(tokens, params, *, n_heads, layer="last",
                          batch_block=8, weight_quant="bf16"):
    """tokens: int32 [B, S].  Returns float32 [B, S, D] (output of ln_final).

    weight_quant: "bf16" (default) or "int8" (per-out-channel quantized weight
    streaming — halves weight DMA bytes and double-buffered weight VMEM; use on
    DMA-bound v5e/v6e or to fit large widths in v7x's 64 MiB VMEM).
    """
    assert layer in ("last", "penultimate")
    assert weight_quant in ("bf16", "int8")
    layer_idx = 0 if layer == "last" else 1   # penultimate drops the last resblock

    # Glue: embedding gather + positional embedding (not the hot path).
    x = params["token_embedding"][tokens] + params["positional_embedding"][None]
    x = x.astype(jnp.float32)
    B0, S0, D = x.shape

    # Pad S to a sublane multiple; causal masking keeps valid rows unaffected.
    S = ((S0 + 7) // 8) * 8
    if S != S0:
        x = jnp.pad(x, ((0, 0), (0, S - S0), (0, 0)))

    # Pick the batch tile and PAD the batch up to a multiple of it (instead of
    # silently shrinking the tile), so Bt*S keeps the MXU filled and per-layer
    # weights are re-streamed as few times as possible.
    # (On v7x keep nb >= 2 if you want both TensorCores busy.)
    bt = max(1, min(batch_block, B0))
    nb = (B0 + bt - 1) // bt
    B = nb * bt
    if B != B0:
        x = jnp.pad(x, ((0, B - B0), (0, 0), (0, 0)))

    total_layers = params["w_qkv"].shape[0]
    n_layers = total_layers - layer_idx
    assert n_layers >= 1

    per_layer, lnf_g, lnf_b = _prep_weights(params, n_heads, weight_quant)

    def layer_spec(arr):
        nd = arr.ndim
        return pl.BlockSpec((1,) + tuple(arr.shape[1:]),
                            lambda b, l, _nd=nd: (l,) + (0,) * (_nd - 1))

    in_specs = (
        [pl.BlockSpec((bt, S, D), lambda b, l: (b, 0, 0))]
        + [layer_spec(w) for w in per_layer]
        + [pl.BlockSpec(tuple(lnf_g.shape), lambda b, l: (0, 0)),
           pl.BlockSpec(tuple(lnf_b.shape), lambda b, l: (0, 0))]
    )

    # VMEM plan: double-buffered layer weights + double-buffered activation
    # blocks + scratches + matmul/attention intermediates, clamped to 7/8 of the
    # physical VMEM (64 MiB v7x, 128 MiB v5e/v6e).  If this does not fit on v7x
    # at full width, use weight_quant="int8".
    per_layer_bytes = sum(int(math.prod(a.shape[1:])) * a.dtype.itemsize
                          for a in per_layer)
    io_block_bytes = bt * S * D * 4
    scratch_bytes = bt * S * D * (4 + 2)
    interm_bytes = bt * S * (3 * D * (4 + 2) + 4 * D * 4 + 2 * S * 4)
    need = (2 * per_layer_bytes + 4 * io_block_bytes
            + scratch_bytes + interm_bytes + (8 << 20))
    try:
        phys_vmem = int(getattr(pltpu.get_tpu_info(), "vmem_capacity_bytes",
                                64 << 20))
    except Exception:
        phys_vmem = 64 << 20
    vmem_limit = int(min(max(need, 32 << 20), (phys_vmem * 7) // 8))

    flops = 2 * B * S * n_layers * 12 * D * D + 4 * B * n_layers * S * S * D
    transc = B * n_layers * (n_heads * S * S + 4 * D * S)
    bytes_accessed = nb * n_layers * per_layer_bytes + 2 * B * S * D * 4

    kernel = functools.partial(clip_resblock_kernel, n_heads=n_heads)

    out = pl.pallas_call(
        kernel,
        out_shape=jax.ShapeDtypeStruct((B, S, D), jnp.float32),
        grid_spec=pltpu.PrefetchScalarGridSpec(
            num_scalar_prefetch=0,
            grid=(nb, n_layers),
            in_specs=in_specs,
            out_specs=pl.BlockSpec((bt, S, D), lambda b, l: (b, 0, 0)),
            scratch_shapes=[pltpu.VMEM((bt, S, D), jnp.float32),    # residual stream
                            pltpu.VMEM((bt, S, D), jnp.bfloat16)],  # attn head outs
        ),
        compiler_params=pltpu.CompilerParams(
            dimension_semantics=("parallel", "arbitrary"),
            vmem_limit_bytes=vmem_limit),
        cost_estimate=pl.CostEstimate(flops=int(flops),
                                      transcendentals=int(transc),
                                      bytes_accessed=int(bytes_accessed)),
    )(x, *per_layer, lnf_g, lnf_b)

    return out[:B0, :S0]


def _reference_forward(tokens, params, *, n_heads, layer="last"):
    """Pure-JAX f32 reference matching the PyTorch module (erf GELU)."""
    x = (params["token_embedding"][tokens]
         + params["positional_embedding"][None]).astype(jnp.float32)
    B, S, D = x.shape
    H, hd = n_heads, D // n_heads
    n_layers = params["w_qkv"].shape[0] - (0 if layer == "last" else 1)
    mask = jnp.where(jnp.tril(jnp.ones((S, S), dtype=bool)), 0.0, -jnp.inf)
    mask = mask.astype(jnp.float32)
    for l in range(n_layers):
        h = _layernorm(x, params["ln1_g"][l], params["ln1_b"][l])
        qkv = h @ params["w_qkv"][l].T + params["b_qkv"][l]
        q, k, v = jnp.split(qkv, 3, axis=-1)
        q = q.reshape(B, S, H, hd).transpose(0, 2, 1, 3) / math.sqrt(hd)
        k = k.reshape(B, S, H, hd).transpose(0, 2, 1, 3)
        v = v.reshape(B, S, H, hd).transpose(0, 2, 1, 3)
        s = q @ jnp.swapaxes(k, -1, -2) + mask
        p = jax.nn.softmax(s, axis=-1)
        o = (p @ v).transpose(0, 2, 1, 3).reshape(B, S, D)
        x = x + o @ params["w_o"][l].T + params["b_o"][l]
        h = _layernorm(x, params["ln2_g"][l], params["ln2_b"][l])
        h = jax.nn.gelu(h @ params["w_fc1"][l].T + params["b_fc1"][l],
                        approximate=False)
        x = x + h @ params["w_fc2"][l].T + params["b_fc2"][l]
    return _layernorm(x, params["lnf_g"], params["lnf_b"])


def init_params(key, *, vocab, seq, width, n_layers, mlp_ratio=4):
    """Deterministic synthetic weights with the shapes implied by the OpenCLIP text tower."""
    D = width
    ks = jax.random.split(key, 10)

    def nrm(k, shape, scale=0.02):
        return scale * jax.random.normal(k, shape, dtype=jnp.float32)

    return {
        "token_embedding":      nrm(ks[0], (vocab, D)),
        "positional_embedding": nrm(ks[1], (seq, D), 0.01),
        "ln1_g": jnp.ones((n_layers, 1, D), jnp.float32),
        "ln1_b": jnp.zeros((n_layers, 1, D), jnp.float32),
        "w_qkv": nrm(ks[2], (n_layers, 3 * D, D)),           # in_proj_weight [3D, D]
        "b_qkv": nrm(ks[3], (n_layers, 1, 3 * D), 0.01),
        "w_o":   nrm(ks[4], (n_layers, D, D)),               # out_proj.weight [D, D]
        "b_o":   nrm(ks[5], (n_layers, 1, D), 0.01),
        "ln2_g": jnp.ones((n_layers, 1, D), jnp.float32),
        "ln2_b": jnp.zeros((n_layers, 1, D), jnp.float32),
        "w_fc1": nrm(ks[6], (n_layers, mlp_ratio * D, D)),   # mlp.c_fc [4D, D]
        "b_fc1": nrm(ks[7], (n_layers, 1, mlp_ratio * D), 0.01),
        "w_fc2": nrm(ks[8], (n_layers, D, mlp_ratio * D)),   # mlp.c_proj [D, 4D]
        "b_fc2": nrm(ks[9], (n_layers, 1, D), 0.01),
        "lnf_g": jnp.ones((1, D), jnp.float32),              # ln_final
        "lnf_b": jnp.zeros((1, D), jnp.float32),
    }


if __name__ == "__main__":
    # Small, module-consistent shapes: batch=4, seq(max_length)=8, width=32,
    # heads=4, layers=2, vocab=64; 2 sequences stacked per grid step (nb=2 so
    # the batch grid axis / megacore path is exercised).
    B, S, D, H, L, V = 4, 8, 32, 4, 2, 64
    key = jax.random.PRNGKey(0)
    k_params, k_tok = jax.random.split(key)

    params = init_params(k_params, vocab=V, seq=S, width=D, n_layers=L)
    # TODO(synk): open_clip.tokenize (BPE text tokenization) has no kernel
    # equivalent; the kernel consumes integer token ids directly.
    tokens = jax.random.randint(k_tok, (B, S), 0, V, dtype=jnp.int32)

    z = frozen_openclip_embed(tokens, params, n_heads=H, layer="last",
                              batch_block=2)
    jax.block_until_ready(z)
    assert z.shape == (B, S, D) and z.dtype == jnp.float32
    assert bool(jnp.all(jnp.isfinite(z)))

    # Correctness vs. a pure-JAX f32 reference (bf16 MXU inputs, approx softmax
    # reciprocal and tanh-GELU account for the small drift).
    z_ref = _reference_forward(tokens, params, n_heads=H, layer="last")
    max_err = float(jnp.max(jnp.abs(z - z_ref)))
    assert max_err < 1e-1, f"max abs error vs reference: {max_err}"

    print("KERNEL_OK")
</pallas_src>

<mosaic_0001>
module attributes {stable_mosaic.version = 11 : i64} {
  func.func @clip_resblock_kernel(%arg0: i32, %arg1: i32, %arg2: memref<2x8x32xf32, #tpu.memory_space<vmem>>, %arg3: memref<1x1x32xf32, #tpu.memory_space<vmem>>, %arg4: memref<1x1x32xf32, #tpu.memory_space<vmem>>, %arg5: memref<1x32x96xbf16, #tpu.memory_space<vmem>>, %arg6: memref<1x1x96xf32, #tpu.memory_space<vmem>>, %arg7: memref<1x1x96xf32, #tpu.memory_space<vmem>>, %arg8: memref<1x32x32xbf16, #tpu.memory_space<vmem>>, %arg9: memref<1x1x32xf32, #tpu.memory_space<vmem>>, %arg10: memref<1x1x32xf32, #tpu.memory_space<vmem>>, %arg11: memref<1x1x32xf32, #tpu.memory_space<vmem>>, %arg12: memref<1x1x32xf32, #tpu.memory_space<vmem>>, %arg13: memref<1x32x128xbf16, #tpu.memory_space<vmem>>, %arg14: memref<1x1x128xf32, #tpu.memory_space<vmem>>, %arg15: memref<1x1x128xf32, #tpu.memory_space<vmem>>, %arg16: memref<1x128x32xbf16, #tpu.memory_space<vmem>>, %arg17: memref<1x1x32xf32, #tpu.memory_space<vmem>>, %arg18: memref<1x1x32xf32, #tpu.memory_space<vmem>>, %arg19: memref<1x32xf32, #tpu.memory_space<vmem>>, %arg20: memref<1x32xf32, #tpu.memory_space<vmem>>, %arg21: memref<2x8x32xf32, #tpu.memory_space<vmem>>, %arg22: memref<2x8x32xf32, #tpu.memory_space<vmem>>, %arg23: memref<2x8x32xbf16, #tpu.memory_space<vmem>>) attributes {dimension_semantics = [#tpu.dimension_semantics<parallel>, #tpu.dimension_semantics<arbitrary>], iteration_bounds = array<i64: 2, 2>, scalar_prefetch = 0 : i64, scratch_operands = 2 : i64, tpu.core_type = #tpu.core_type<tc>, window_params = [{transform_indices = @transform_0, window_bounds = array<i64: 2, 8, 32>}, {transform_indices = @transform_1, window_bounds = array<i64: 1, 1, 32>}, {transform_indices = @transform_2, window_bounds = array<i64: 1, 1, 32>}, {transform_indices = @transform_3, window_bounds = array<i64: 1, 32, 96>}, {transform_indices = @transform_4, window_bounds = array<i64: 1, 1, 96>}, {transform_indices = @transform_5, window_bounds = array<i64: 1, 1, 96>}, {transform_indices = @transform_6, window_bounds = array<i64: 1, 32, 32>}, {transform_indices = @transform_7, window_bounds = array<i64: 1, 1, 32>}, {transform_indices = @transform_8, window_bounds = array<i64: 1, 1, 32>}, {transform_indices = @transform_9, window_bounds = array<i64: 1, 1, 32>}, {transform_indices = @transform_10, window_bounds = array<i64: 1, 1, 32>}, {transform_indices = @transform_11, window_bounds = array<i64: 1, 32, 128>}, {transform_indices = @transform_12, window_bounds = array<i64: 1, 1, 128>}, {transform_indices = @transform_13, window_bounds = array<i64: 1, 1, 128>}, {transform_indices = @transform_14, window_bounds = array<i64: 1, 128, 32>}, {transform_indices = @transform_15, window_bounds = array<i64: 1, 1, 32>}, {transform_indices = @transform_16, window_bounds = array<i64: 1, 1, 32>}, {pipeline_mode = #tpu.pipeline_mode<synchronous>, transform_indices = @transform_17, window_bounds = array<i64: 1, 32>}, {pipeline_mode = #tpu.pipeline_mode<synchronous>, transform_indices = @transform_18, window_bounds = array<i64: 1, 32>}, {transform_indices = @transform_19, window_bounds = array<i64: 2, 8, 32>}]} {
    %c0_i32 = arith.constant 0 : i32
    %0 = arith.cmpi eq, %arg1, %c0_i32 : i32
    %1 = arith.extui %0 : i1 to i32
    %c0_i32_0 = arith.constant 0 : i32
    %2 = arith.cmpi ne, %1, %c0_i32_0 : i32
    scf.if %2 {
      %c0_102 = arith.constant 0 : index
      %c0_103 = arith.constant 0 : index
      %c0_104 = arith.constant 0 : index
      %218 = vector.load %arg2[%c0_102, %c0_103, %c0_104] : memref<2x8x32xf32, #tpu.memory_space<vmem>>, vector<2x8x32xf32>
      %c0_105 = arith.constant 0 : index
      %c0_106 = arith.constant 0 : index
      %c0_107 = arith.constant 0 : index
      %219 = vector.load %arg22[%c0_105, %c0_106, %c0_107] : memref<2x8x32xf32, #tpu.memory_space<vmem>>, vector<2x8x32xf32>
      tpu.vector_store %arg22[%c0_105, %c0_106, %c0_107], %218 {strides = array<i32>} : memref<2x8x32xf32, #tpu.memory_space<vmem>>, vector<2x8x32xf32>,
    } else {
    }
    %c0 = arith.constant 0 : index
    %c0_1 = arith.constant 0 : index
    %c0_2 = arith.constant 0 : index
    %3 = vector.load %arg22[%c0, %c0_1, %c0_2] : memref<2x8x32xf32, #tpu.memory_space<vmem>>, vector<2x8x32xf32>
    %4 = vector.shape_cast %3 : vector<2x8x32xf32> to vector<16x32xf32>
    %5 = tpu.iota {dimensions = array<i32: 0>} : vector<8x8xi32>
    %6 = tpu.iota {dimensions = array<i32: 1>} : vector<8x8xi32>
    %7 = arith.cmpi sle, %6, %5 : vector<8x8xi32>
    %cst = arith.constant 0.000000e+00 : f32
    %cst_3 = arith.constant 0xFF800000 : f32
    %8 = vector.broadcast %cst : f32 to vector<8x8xf32>
    %9 = vector.broadcast %cst_3 : f32 to vector<8x8xf32>
    %10 = arith.select %7, %8, %9 : vector<8x8xi1>, vector<8x8xf32>
    %c0_4 = arith.constant 0 : index
    %c0_5 = arith.constant 0 : index
    %c0_6 = arith.constant 0 : index
    %11 = vector.load %arg3[%c0_4, %c0_5, %c0_6] : memref<1x1x32xf32, #tpu.memory_space<vmem>>, vector<1x1x32xf32>
    %12 = vector.shape_cast %11 : vector<1x1x32xf32> to vector<1x32xf32>
    %c0_7 = arith.constant 0 : index
    %c0_8 = arith.constant 0 : index
    %c0_9 = arith.constant 0 : index
    %13 = vector.load %arg4[%c0_7, %c0_8, %c0_9] : memref<1x1x32xf32, #tpu.memory_space<vmem>>, vector<1x1x32xf32>
    %14 = vector.shape_cast %13 : vector<1x1x32xf32> to vector<1x32xf32>
    %cst_10 = arith.constant dense<0.000000e+00> : vector<16xf32>
    %15 = vector.multi_reduction <add>, %4, %cst_10 [1] : vector<16x32xf32> to vector<16xf32>
    %16 = vector.shape_cast %15 : vector<16xf32> to vector<16x1xf32>
    %cst_11 = arith.constant 3.200000e+01 : f32
    %17 = vector.broadcast %cst_11 : f32 to vector<16x1xf32>
    %18 = arith.divf %16, %17 : vector<16x1xf32>
    %19 = vector.broadcast %18 : vector<16x1xf32> to vector<16x32xf32>
    %20 = arith.subf %4, %19 : vector<16x32xf32>
    %21 = arith.mulf %20, %20 : vector<16x32xf32>
    %cst_12 = arith.constant dense<0.000000e+00> : vector<16xf32>
    %22 = vector.multi_reduction <add>, %21, %cst_12 [1] : vector<16x32xf32> to vector<16xf32>
    %23 = vector.shape_cast %22 : vector<16xf32> to vector<16x1xf32>
    %cst_13 = arith.constant 3.200000e+01 : f32
    %24 = vector.broadcast %cst_13 : f32 to vector<16x1xf32>
    %25 = arith.divf %23, %24 : vector<16x1xf32>
    %26 = vector.broadcast %18 : vector<16x1xf32> to vector<16x32xf32>
    %27 = arith.subf %4, %26 : vector<16x32xf32>
    %cst_14 = arith.constant 9.99999974E-6 : f32
    %28 = vector.broadcast %cst_14 : f32 to vector<16x1xf32>
    %29 = arith.addf %25, %28 : vector<16x1xf32>
    %30 = math.rsqrt %29 : vector<16x1xf32>
    %31 = vector.broadcast %30 : vector<16x1xf32> to vector<16x32xf32>
    %32 = arith.mulf %27, %31 : vector<16x32xf32>
    %33 = vector.broadcast %12 : vector<1x32xf32> to vector<16x32xf32>
    %34 = arith.mulf %32, %33 : vector<16x32xf32>
    %35 = vector.broadcast %14 : vector<1x32xf32> to vector<16x32xf32>
    %36 = arith.addf %34, %35 : vector<16x32xf32>
    %37 = arith.truncf %36 : vector<16x32xf32> to vector<16x32xbf16>
    %c0_15 = arith.constant 0 : index
    %c0_16 = arith.constant 0 : index
    %c0_17 = arith.constant 0 : index
    %38 = vector.load %arg5[%c0_15, %c0_16, %c0_17] : memref<1x32x96xbf16, #tpu.memory_space<vmem>>, vector<1x32x96xbf16>
    %39 = vector.shape_cast %38 : vector<1x32x96xbf16> to vector<32x96xbf16>
    %cst_18 = arith.constant dense<0.000000e+00> : vector<16x96xf32>
    %40 = tpu.matmul %37, %39, %cst_18 {dimension_numbers = #tpu.dot_dimension_numbers<[1], [0], [0], [1], [0, 0, 1, 1], [], []>} : vector<16x32xbf16>, vector<32x96xbf16>, vector<16x96xf32> -> vector<16x96xf32>
    %c0_19 = arith.constant 0 : index
    %c0_20 = arith.constant 0 : index
    %c0_21 = arith.constant 0 : index
    %41 = vector.load %arg6[%c0_19, %c0_20, %c0_21] : memref<1x1x96xf32, #tpu.memory_space<vmem>>, vector<1x1x96xf32>
    %42 = vector.shape_cast %41 : vector<1x1x96xf32> to vector<1x96xf32>
    %43 = vector.broadcast %42 : vector<1x96xf32> to vector<16x96xf32>
    %44 = arith.mulf %40, %43 : vector<16x96xf32>
    %c0_22 = arith.constant 0 : index
    %c0_23 = arith.constant 0 : index
    %c0_24 = arith.constant 0 : index
    %45 = vector.load %arg7[%c0_22, %c0_23, %c0_24] : memref<1x1x96xf32, #tpu.memory_space<vmem>>, vector<1x1x96xf32>
    %46 = vector.shape_cast %45 : vector<1x1x96xf32> to vector<1x96xf32>
    %47 = vector.broadcast %46 : vector<1x96xf32> to vector<16x96xf32>
    %48 = arith.addf %44, %47 : vector<16x96xf32>
    %49 = arith.truncf %48 : vector<16x96xf32> to vector<16x96xbf16>
    %50 = vector.shape_cast %49 : vector<16x96xbf16> to vector<2x8x96xbf16>
    %51 = vector.extract_strided_slice %50 {offsets = [0, 0, 0], sizes = [2, 8, 8], strides = [1, 1, 1]} : vector<2x8x96xbf16> to vector<2x8x8xbf16>
    %52 = vector.extract_strided_slice %50 {offsets = [0, 0, 32], sizes = [2, 8, 8], strides = [1, 1, 1]} : vector<2x8x96xbf16> to vector<2x8x8xbf16>
    %53 = vector.extract_strided_slice %50 {offsets = [0, 0, 64], sizes = [2, 8, 8], strides = [1, 1, 1]} : vector<2x8x96xbf16> to vector<2x8x8xbf16>
    "tpu.trace_start"() <{level = 10 : i32, message = "bqd,bkd->bqk"}> : () -> ()
    %cst_25 = arith.constant dense<0.000000e+00> : vector<2x8x8xf32>
    %54 = tpu.matmul %51, %52, %cst_25 {dimension_numbers = #tpu.dot_dimension_numbers<[2], [2], [1], [1], [0, 0, 0, 1, 1, 1], [0], [0]>} : vector<2x8x8xbf16>, vector<2x8x8xbf16>, vector<2x8x8xf32> -> vector<2x8x8xf32>
    "tpu.trace_stop"() : () -> ()
    %55 = vector.shape_cast %10 : vector<8x8xf32> to vector<1x8x8xf32>
    %56 = vector.broadcast %55 : vector<1x8x8xf32> to vector<2x8x8xf32>
    %57 = arith.addf %54, %56 : vector<2x8x8xf32>
    %cst_26 = arith.constant dense<0xFF800000> : vector<2x8xf32>
    %58 = vector.multi_reduction <maximumf>, %57, %cst_26 [2] : vector<2x8x8xf32> to vector<2x8xf32>
    %59 = vector.shape_cast %58 : vector<2x8xf32> to vector<2x8x1xf32>
    %60 = vector.broadcast %59 : vector<2x8x1xf32> to vector<2x8x8xf32>
    %61 = arith.subf %57, %60 : vector<2x8x8xf32>
    %62 = math.exp %61 : vector<2x8x8xf32>
    %cst_27 = arith.constant dense<0.000000e+00> : vector<2x8xf32>
    %63 = vector.multi_reduction <add>, %62, %cst_27 [2] : vector<2x8x8xf32> to vector<2x8xf32>
    %64 = vector.shape_cast %63 : vector<2x8xf32> to vector<2x8x1xf32>
    %65 = tpu.reciprocal %64 {approx = true} : vector<2x8x1xf32> -> vector<2x8x1xf32>
    %66 = vector.broadcast %65 : vector<2x8x1xf32> to vector<2x8x8xf32>
    %67 = arith.mulf %62, %66 : vector<2x8x8xf32>
    %68 = arith.truncf %67 : vector<2x8x8xf32> to vector<2x8x8xbf16>
    "tpu.trace_start"() <{level = 10 : i32, message = "bqk,bkd->bqd"}> : () -> ()
    %cst_28 = arith.constant dense<0.000000e+00> : vector<2x8x8xf32>
    %69 = tpu.matmul %68, %53, %cst_28 {dimension_numbers = #tpu.dot_dimension_numbers<[2], [1], [1], [2], [0, 0, 0, 1, 1, 2], [0], [0]>} : vector<2x8x8xbf16>, vector<2x8x8xbf16>, vector<2x8x8xf32> -> vector<2x8x8xf32>
    "tpu.trace_stop"() : () -> ()
    %70 = arith.truncf %69 : vector<2x8x8xf32> to vector<2x8x8xbf16>
    %c0_29 = arith.constant 0 : index
    %c0_30 = arith.constant 0 : index
    %c0_31 = arith.constant 0 : index
    %71 = vector.load %arg23[%c0_29, %c0_30, %c0_31] : memref<2x8x32xbf16, #tpu.memory_space<vmem>>, vector<2x8x8xbf16>
    tpu.vector_store %arg23[%c0_29, %c0_30, %c0_31], %70 {strides = array<i32>} : memref<2x8x32xbf16, #tpu.memory_space<vmem>>, vector<2x8x8xbf16>,
    %72 = vector.extract_strided_slice %50 {offsets = [0, 0, 8], sizes = [2, 8, 8], strides = [1, 1, 1]} : vector<2x8x96xbf16> to vector<2x8x8xbf16>
    %73 = vector.extract_strided_slice %50 {offsets = [0, 0, 40], sizes = [2, 8, 8], strides = [1, 1, 1]} : vector<2x8x96xbf16> to vector<2x8x8xbf16>
    %74 = vector.extract_strided_slice %50 {offsets = [0, 0, 72], sizes = [2, 8, 8], strides = [1, 1, 1]} : vector<2x8x96xbf16> to vector<2x8x8xbf16>
    "tpu.trace_start"() <{level = 10 : i32, message = "bqd,bkd->bqk"}> : () -> ()
    %cst_32 = arith.constant dense<0.000000e+00> : vector<2x8x8xf32>
    %75 = tpu.matmul %72, %73, %cst_32 {dimension_numbers = #tpu.dot_dimension_numbers<[2], [2], [1], [1], [0, 0, 0, 1, 1, 1], [0], [0]>} : vector<2x8x8xbf16>, vector<2x8x8xbf16>, vector<2x8x8xf32> -> vector<2x8x8xf32>
    "tpu.trace_stop"() : () -> ()
    %76 = vector.shape_cast %10 : vector<8x8xf32> to vector<1x8x8xf32>
    %77 = vector.broadcast %76 : vector<1x8x8xf32> to vector<2x8x8xf32>
    %78 = arith.addf %75, %77 : vector<2x8x8xf32>
    %cst_33 = arith.constant dense<0xFF800000> : vector<2x8xf32>
    %79 = vector.multi_reduction <maximumf>, %78, %cst_33 [2] : vector<2x8x8xf32> to vector<2x8xf32>
    %80 = vector.shape_cast %79 : vector<2x8xf32> to vector<2x8x1xf32>
    %81 = vector.broadcast %80 : vector<2x8x1xf32> to vector<2x8x8xf32>
    %82 = arith.subf %78, %81 : vector<2x8x8xf32>
    %83 = math.exp %82 : vector<2x8x8xf32>
    %cst_34 = arith.constant dense<0.000000e+00> : vector<2x8xf32>
    %84 = vector.multi_reduction <add>, %83, %cst_34 [2] : vector<2x8x8xf32> to vector<2x8xf32>
    %85 = vector.shape_cast %84 : vector<2x8xf32> to vector<2x8x1xf32>
    %86 = tpu.reciprocal %85 {approx = true} : vector<2x8x1xf32> -> vector<2x8x1xf32>
    %87 = vector.broadcast %86 : vector<2x8x1xf32> to vector<2x8x8xf32>
    %88 = arith.mulf %83, %87 : vector<2x8x8xf32>
    %89 = arith.truncf %88 : vector<2x8x8xf32> to vector<2x8x8xbf16>
    "tpu.trace_start"() <{level = 10 : i32, message = "bqk,bkd->bqd"}> : () -> ()
    %cst_35 = arith.constant dense<0.000000e+00> : vector<2x8x8xf32>
    %90 = tpu.matmul %89, %74, %cst_35 {dimension_numbers = #tpu.dot_dimension_numbers<[2], [1], [1], [2], [0, 0, 0, 1, 1, 2], [0], [0]>} : vector<2x8x8xbf16>, vector<2x8x8xbf16>, vector<2x8x8xf32> -> vector<2x8x8xf32>
    "tpu.trace_stop"() : () -> ()
    %91 = arith.truncf %90 : vector<2x8x8xf32> to vector<2x8x8xbf16>
    %c0_36 = arith.constant 0 : index
    %c0_37 = arith.constant 0 : index
    %c8 = arith.constant 8 : index
    %92 = vector.load %arg23[%c0_36, %c0_37, %c8] : memref<2x8x32xbf16, #tpu.memory_space<vmem>>, vector<2x8x8xbf16>
    tpu.vector_store %arg23[%c0_36, %c0_37, %c8], %91 {strides = array<i32>} : memref<2x8x32xbf16, #tpu.memory_space<vmem>>, vector<2x8x8xbf16>,
    %93 = vector.extract_strided_slice %50 {offsets = [0, 0, 16], sizes = [2, 8, 8], strides = [1, 1, 1]} : vector<2x8x96xbf16> to vector<2x8x8xbf16>
    %94 = vector.extract_strided_slice %50 {offsets = [0, 0, 48], sizes = [2, 8, 8], strides = [1, 1, 1]} : vector<2x8x96xbf16> to vector<2x8x8xbf16>
    %95 = vector.extract_strided_slice %50 {offsets = [0, 0, 80], sizes = [2, 8, 8], strides = [1, 1, 1]} : vector<2x8x96xbf16> to vector<2x8x8xbf16>
    "tpu.trace_start"() <{level = 10 : i32, message = "bqd,bkd->bqk"}> : () -> ()
    %cst_38 = arith.constant dense<0.000000e+00> : vector<2x8x8xf32>
    %96 = tpu.matmul %93, %94, %cst_38 {dimension_numbers = #tpu.dot_dimension_numbers<[2], [2], [1], [1], [0, 0, 0, 1, 1, 1], [0], [0]>} : vector<2x8x8xbf16>, vector<2x8x8xbf16>, vector<2x8x8xf32> -> vector<2x8x8xf32>
    "tpu.trace_stop"() : () -> ()
    %97 = vector.shape_cast %10 : vector<8x8xf32> to vector<1x8x8xf32>
    %98 = vector.broadcast %97 : vector<1x8x8xf32> to vector<2x8x8xf32>
    %99 = arith.addf %96, %98 : vector<2x8x8xf32>
    %cst_39 = arith.constant dense<0xFF800000> : vector<2x8xf32>
    %100 = vector.multi_reduction <maximumf>, %99, %cst_39 [2] : vector<2x8x8xf32> to vector<2x8xf32>
    %101 = vector.shape_cast %100 : vector<2x8xf32> to vector<2x8x1xf32>
    %102 = vector.broadcast %101 : vector<2x8x1xf32> to vector<2x8x8xf32>
    %103 = arith.subf %99, %102 : vector<2x8x8xf32>
    %104 = math.exp %103 : vector<2x8x8xf32>
    %cst_40 = arith.constant dense<0.000000e+00> : vector<2x8xf32>
    %105 = vector.multi_reduction <add>, %104, %cst_40 [2] : vector<2x8x8xf32> to vector<2x8xf32>
    %106 = vector.shape_cast %105 : vector<2x8xf32> to vector<2x8x1xf32>
    %107 = tpu.reciprocal %106 {approx = true} : vector<2x8x1xf32> -> vector<2x8x1xf32>
    %108 = vector.broadcast %107 : vector<2x8x1xf32> to vector<2x8x8xf32>
    %109 = arith.mulf %104, %108 : vector<2x8x8xf32>
    %110 = arith.truncf %109 : vector<2x8x8xf32> to vector<2x8x8xbf16>
    "tpu.trace_start"() <{level = 10 : i32, message = "bqk,bkd->bqd"}> : () -> ()
    %cst_41 = arith.constant dense<0.000000e+00> : vector<2x8x8xf32>
    %111 = tpu.matmul %110, %95, %cst_41 {dimension_numbers = #tpu.dot_dimension_numbers<[2], [1], [1], [2], [0, 0, 0, 1, 1, 2], [0], [0]>} : vector<2x8x8xbf16>, vector<2x8x8xbf16>, vector<2x8x8xf32> -> vector<2x8x8xf32>
    "tpu.trace_stop"() : () -> ()
    %112 = arith.truncf %111 : vector<2x8x8xf32> to vector<2x8x8xbf16>
    %c0_42 = arith.constant 0 : index
    %c0_43 = arith.constant 0 : index
    %c16 = arith.constant 16 : index
    %113 = vector.load %arg23[%c0_42, %c0_43, %c16] : memref<2x8x32xbf16, #tpu.memory_space<vmem>>, vector<2x8x8xbf16>
    tpu.vector_store %arg23[%c0_42, %c0_43, %c16], %112 {strides = array<i32>} : memref<2x8x32xbf16, #tpu.memory_space<vmem>>, vector<2x8x8xbf16>,
    %114 = vector.extract_strided_slice %50 {offsets = [0, 0, 24], sizes = [2, 8, 8], strides = [1, 1, 1]} : vector<2x8x96xbf16> to vector<2x8x8xbf16>
    %115 = vector.extract_strided_slice %50 {offsets = [0, 0, 56], sizes = [2, 8, 8], strides = [1, 1, 1]} : vector<2x8x96xbf16> to vector<2x8x8xbf16>
    %116 = vector.extract_strided_slice %50 {offsets = [0, 0, 88], sizes = [2, 8, 8], strides = [1, 1, 1]} : vector<2x8x96xbf16> to vector<2x8x8xbf16>
    "tpu.trace_start"() <{level = 10 : i32, message = "bqd,bkd->bqk"}> : () -> ()
    %cst_44 = arith.constant dense<0.000000e+00> : vector<2x8x8xf32>
    %117 = tpu.matmul %114, %115, %cst_44 {dimension_numbers = #tpu.dot_dimension_numbers<[2], [2], [1], [1], [0, 0, 0, 1, 1, 1], [0], [0]>} : vector<2x8x8xbf16>, vector<2x8x8xbf16>, vector<2x8x8xf32> -> vector<2x8x8xf32>
    "tpu.trace_stop"() : () -> ()
    %118 = vector.shape_cast %10 : vector<8x8xf32> to vector<1x8x8xf32>
    %119 = vector.broadcast %118 : vector<1x8x8xf32> to vector<2x8x8xf32>
    %120 = arith.addf %117, %119 : vector<2x8x8xf32>
    %cst_45 = arith.constant dense<0xFF800000> : vector<2x8xf32>
    %121 = vector.multi_reduction <maximumf>, %120, %cst_45 [2] : vector<2x8x8xf32> to vector<2x8xf32>
    %122 = vector.shape_cast %121 : vector<2x8xf32> to vector<2x8x1xf32>
    %123 = vector.broadcast %122 : vector<2x8x1xf32> to vector<2x8x8xf32>
    %124 = arith.subf %120, %123 : vector<2x8x8xf32>
    %125 = math.exp %124 : vector<2x8x8xf32>
    %cst_46 = arith.constant dense<0.000000e+00> : vector<2x8xf32>
    %126 = vector.multi_reduction <add>, %125, %cst_46 [2] : vector<2x8x8xf32> to vector<2x8xf32>
    %127 = vector.shape_cast %126 : vector<2x8xf32> to vector<2x8x1xf32>
    %128 = tpu.reciprocal %127 {approx = true} : vector<2x8x1xf32> -> vector<2x8x1xf32>
    %129 = vector.broadcast %128 : vector<2x8x1xf32> to vector<2x8x8xf32>
    %130 = arith.mulf %125, %129 : vector<2x8x8xf32>
    %131 = arith.truncf %130 : vector<2x8x8xf32> to vector<2x8x8xbf16>
    "tpu.trace_start"() <{level = 10 : i32, message = "bqk,bkd->bqd"}> : () -> ()
    %cst_47 = arith.constant dense<0.000000e+00> : vector<2x8x8xf32>
    %132 = tpu.matmul %131, %116, %cst_47 {dimension_numbers = #tpu.dot_dimension_numbers<[2], [1], [1], [2], [0, 0, 0, 1, 1, 2], [0], [0]>} : vector<2x8x8xbf16>, vector<2x8x8xbf16>, vector<2x8x8xf32> -> vector<2x8x8xf32>
    "tpu.trace_stop"() : () -> ()
    %133 = arith.truncf %132 : vector<2x8x8xf32> to vector<2x8x8xbf16>
    %c0_48 = arith.constant 0 : index
    %c0_49 = arith.constant 0 : index
    %c24 = arith.constant 24 : index
    %134 = vector.load %arg23[%c0_48, %c0_49, %c24] : memref<2x8x32xbf16, #tpu.memory_space<vmem>>, vector<2x8x8xbf16>
    tpu.vector_store %arg23[%c0_48, %c0_49, %c24], %133 {strides = array<i32>} : memref<2x8x32xbf16, #tpu.memory_space<vmem>>, vector<2x8x8xbf16>,
    %c0_50 = arith.constant 0 : index
    %c0_51 = arith.constant 0 : index
    %c0_52 = arith.constant 0 : index
    %135 = vector.load %arg23[%c0_50, %c0_51, %c0_52] : memref<2x8x32xbf16, #tpu.memory_space<vmem>>, vector<2x8x32xbf16>
    %136 = vector.shape_cast %135 : vector<2x8x32xbf16> to vector<16x32xbf16>
    %c0_53 = arith.constant 0 : index
    %c0_54 = arith.constant 0 : index
    %c0_55 = arith.constant 0 : index
    %137 = vector.load %arg8[%c0_53, %c0_54, %c0_55] : memref<1x32x32xbf16, #tpu.memory_space<vmem>>, vector<1x32x32xbf16>
    %138 = vector.shape_cast %137 : vector<1x32x32xbf16> to vector<32x32xbf16>
    %cst_56 = arith.constant dense<0.000000e+00> : vector<16x32xf32>
    %139 = tpu.matmul %136, %138, %cst_56 {dimension_numbers = #tpu.dot_dimension_numbers<[1], [0], [0], [1], [0, 0, 1, 1], [], []>} : vector<16x32xbf16>, vector<32x32xbf16>, vector<16x32xf32> -> vector<16x32xf32>
    %c0_57 = arith.constant 0 : index
    %c0_58 = arith.constant 0 : index
    %c0_59 = arith.constant 0 : index
    %140 = vector.load %arg9[%c0_57, %c0_58, %c0_59] : memref<1x1x32xf32, #tpu.memory_space<vmem>>, vector<1x1x32xf32>
    %141 = vector.shape_cast %140 : vector<1x1x32xf32> to vector<1x32xf32>
    %142 = vector.broadcast %141 : vector<1x32xf32> to vector<16x32xf32>
    %143 = arith.mulf %139, %142 : vector<16x32xf32>
    %c0_60 = arith.constant 0 : index
    %c0_61 = arith.constant 0 : index
    %c0_62 = arith.constant 0 : index
    %144 = vector.load %arg10[%c0_60, %c0_61, %c0_62] : memref<1x1x32xf32, #tpu.memory_space<vmem>>, vector<1x1x32xf32>
    %145 = vector.shape_cast %144 : vector<1x1x32xf32> to vector<1x32xf32>
    %146 = vector.broadcast %145 : vector<1x32xf32> to vector<16x32xf32>
    %147 = arith.addf %143, %146 : vector<16x32xf32>
    %148 = arith.addf %4, %147 : vector<16x32xf32>
    %c0_63 = arith.constant 0 : index
    %c0_64 = arith.constant 0 : index
    %c0_65 = arith.constant 0 : index
    %149 = vector.load %arg11[%c0_63, %c0_64, %c0_65] : memref<1x1x32xf32, #tpu.memory_space<vmem>>, vector<1x1x32xf32>
    %150 = vector.shape_cast %149 : vector<1x1x32xf32> to vector<1x32xf32>
    %c0_66 = arith.constant 0 : index
    %c0_67 = arith.constant 0 : index
    %c0_68 = arith.constant 0 : index
    %151 = vector.load %arg12[%c0_66, %c0_67, %c0_68] : memref<1x1x32xf32, #tpu.memory_space<vmem>>, vector<1x1x32xf32>
    %152 = vector.shape_cast %151 : vector<1x1x32xf32> to vector<1x32xf32>
    %cst_69 = arith.constant dense<0.000000e+00> : vector<16xf32>
    %153 = vector.multi_reduction <add>, %148, %cst_69 [1] : vector<16x32xf32> to vector<16xf32>
    %154 = vector.shape_cast %153 : vector<16xf32> to vector<16x1xf32>
    %cst_70 = arith.constant 3.200000e+01 : f32
    %155 = vector.broadcast %cst_70 : f32 to vector<16x1xf32>
    %156 = arith.divf %154, %155 : vector<16x1xf32>
    %157 = vector.broadcast %156 : vector<16x1xf32> to vector<16x32xf32>
    %158 = arith.subf %148, %157 : vector<16x32xf32>
    %159 = arith.mulf %158, %158 : vector<16x32xf32>
    %cst_71 = arith.constant dense<0.000000e+00> : vector<16xf32>
    %160 = vector.multi_reduction <add>, %159, %cst_71 [1] : vector<16x32xf32> to vector<16xf32>
    %161 = vector.shape_cast %160 : vector<16xf32> to vector<16x1xf32>
    %cst_72 = arith.constant 3.200000e+01 : f32
    %162 = vector.broadcast %cst_72 : f32 to vector<16x1xf32>
    %163 = arith.divf %161, %162 : vector<16x1xf32>
    %164 = vector.broadcast %156 : vector<16x1xf32> to vector<16x32xf32>
    %165 = arith.subf %148, %164 : vector<16x32xf32>
    %cst_73 = arith.constant 9.99999974E-6 : f32
    %166 = vector.broadcast %cst_73 : f32 to vector<16x1xf32>
    %167 = arith.addf %163, %166 : vector<16x1xf32>
    %168 = math.rsqrt %167 : vector<16x1xf32>
    %169 = vector.broadcast %168 : vector<16x1xf32> to vector<16x32xf32>
    %170 = arith.mulf %165, %169 : vector<16x32xf32>
    %171 = vector.broadcast %150 : vector<1x32xf32> to vector<16x32xf32>
    %172 = arith.mulf %170, %171 : vector<16x32xf32>
    %173 = vector.broadcast %152 : vector<1x32xf32> to vector<16x32xf32>
    %174 = arith.addf %172, %173 : vector<16x32xf32>
    %175 = arith.truncf %174 : vector<16x32xf32> to vector<16x32xbf16>
    %c0_74 = arith.constant 0 : index
    %c0_75 = arith.constant 0 : index
    %c0_76 = arith.constant 0 : index
    %176 = vector.load %arg13[%c0_74, %c0_75, %c0_76] : memref<1x32x128xbf16, #tpu.memory_space<vmem>>, vector<1x32x128xbf16>
    %177 = vector.shape_cast %176 : vector<1x32x128xbf16> to vector<32x128xbf16>
    %cst_77 = arith.constant dense<0.000000e+00> : vector<16x128xf32>
    %178 = tpu.matmul %175, %177, %cst_77 {dimension_numbers = #tpu.dot_dimension_numbers<[1], [0], [0], [1], [0, 0, 1, 1], [], []>} : vector<16x32xbf16>, vector<32x128xbf16>, vector<16x128xf32> -> vector<16x128xf32>
    %c0_78 = arith.constant 0 : index
    %c0_79 = arith.constant 0 : index
    %c0_80 = arith.constant 0 : index
    %179 = vector.load %arg14[%c0_78, %c0_79, %c0_80] : memref<1x1x128xf32, #tpu.memory_space<vmem>>, vector<1x1x128xf32>
    %180 = vector.shape_cast %179 : vector<1x1x128xf32> to vector<1x128xf32>
    %181 = vector.broadcast %180 : vector<1x128xf32> to vector<16x128xf32>
    %182 = arith.mulf %178, %181 : vector<16x128xf32>
    %c0_81 = arith.constant 0 : index
    %c0_82 = arith.constant 0 : index
    %c0_83 = arith.constant 0 : index
    %183 = vector.load %arg15[%c0_81, %c0_82, %c0_83] : memref<1x1x128xf32, #tpu.memory_space<vmem>>, vector<1x1x128xf32>
    %184 = vector.shape_cast %183 : vector<1x1x128xf32> to vector<1x128xf32>
    %185 = vector.broadcast %184 : vector<1x128xf32> to vector<16x128xf32>
    %186 = arith.addf %182, %185 : vector<16x128xf32>
    %187 = arith.mulf %186, %186 : vector<16x128xf32>
    %188 = arith.mulf %186, %187 : vector<16x128xf32>
    %cst_84 = arith.constant 4.471500e-02 : f32
    %189 = vector.broadcast %cst_84 : f32 to vector<16x128xf32>
    %190 = arith.mulf %189, %188 : vector<16x128xf32>
    %191 = arith.addf %186, %190 : vector<16x128xf32>
    %cst_85 = arith.constant 0.797884583 : f32
    %192 = vector.broadcast %cst_85 : f32 to vector<16x128xf32>
    %193 = arith.mulf %192, %191 : vector<16x128xf32>
    %194 = math.tanh %193 : vector<16x128xf32>
    %cst_86 = arith.constant 1.000000e+00 : f32
    %195 = vector.broadcast %cst_86 : f32 to vector<16x128xf32>
    %196 = arith.addf %195, %194 : vector<16x128xf32>
    %cst_87 = arith.constant 5.000000e-01 : f32
    %197 = vector.broadcast %cst_87 : f32 to vector<16x128xf32>
    %198 = arith.mulf %197, %196 : vector<16x128xf32>
    %199 = arith.mulf %186, %198 : vector<16x128xf32>
    %200 = arith.truncf %199 : vector<16x128xf32> to vector<16x128xbf16>
    %c0_88 = arith.constant 0 : index
    %c0_89 = arith.constant 0 : index
    %c0_90 = arith.constant 0 : index
    %201 = vector.load %arg16[%c0_88, %c0_89, %c0_90] : memref<1x128x32xbf16, #tpu.memory_space<vmem>>, vector<1x128x32xbf16>
    %202 = vector.shape_cast %201 : vector<1x128x32xbf16> to vector<128x32xbf16>
    %cst_91 = arith.constant dense<0.000000e+00> : vector<16x32xf32>
    %203 = tpu.matmul %200, %202, %cst_91 {dimension_numbers = #tpu.dot_dimension_numbers<[1], [0], [0], [1], [0, 0, 1, 1], [], []>} : vector<16x128xbf16>, vector<128x32xbf16>, vector<16x32xf32> -> vector<16x32xf32>
    %c0_92 = arith.constant 0 : index
    %c0_93 = arith.constant 0 : index
    %c0_94 = arith.constant 0 : index
    %204 = vector.load %arg17[%c0_92, %c0_93, %c0_94] : memref<1x1x32xf32, #tpu.memory_space<vmem>>, vector<1x1x32xf32>
    %205 = vector.shape_cast %204 : vector<1x1x32xf32> to vector<1x32xf32>
    %206 = vector.broadcast %205 : vector<1x32xf32> to vector<16x32xf32>
    %207 = arith.mulf %203, %206 : vector<16x32xf32>
    %c0_95 = arith.constant 0 : index
    %c0_96 = arith.constant 0 : index
    %c0_97 = arith.constant 0 : index
    %208 = vector.load %arg18[%c0_95, %c0_96, %c0_97] : memref<1x1x32xf32, #tpu.memory_space<vmem>>, vector<1x1x32xf32>
    %209 = vector.shape_cast %208 : vector<1x1x32xf32> to vector<1x32xf32>
    %210 = vector.broadcast %209 : vector<1x32xf32> to vector<16x32xf32>
    %211 = arith.addf %207, %210 : vector<16x32xf32>
    %212 = arith.addf %148, %211 : vector<16x32xf32>
    %213 = vector.shape_cast %212 : vector<16x32xf32> to vector<2x8x32xf32>
    %c0_98 = arith.constant 0 : index
    %c0_99 = arith.constant 0 : index
    %c0_100 = arith.constant 0 : index
    %214 = vector.load %arg22[%c0_98, %c0_99, %c0_100] : memref<2x8x32xf32, #tpu.memory_space<vmem>>, vector<2x8x32xf32>
    tpu.vector_store %arg22[%c0_98, %c0_99, %c0_100], %213 {strides = array<i32>} : memref<2x8x32xf32, #tpu.memory_space<vmem>>, vector<2x8x32xf32>,
    %c1_i32 = arith.constant 1 : i32
    %215 = arith.cmpi eq, %arg1, %c1_i32 : i32
    %216 = arith.extui %215 : i1 to i32
    %c0_i32_101 = arith.constant 0 : i32
    %217 = arith.cmpi ne, %216, %c0_i32_101 : i32
    scf.if %217 {
      %c0_102 = arith.constant 0 : index
      %c0_103 = arith.constant 0 : index
      %218 = vector.load %arg19[%c0_102, %c0_103] : memref<1x32xf32, #tpu.memory_space<vmem>>, vector<1x32xf32>
      %c0_104 = arith.constant 0 : index
      %c0_105 = arith.constant 0 : index
      %219 = vector.load %arg20[%c0_104, %c0_105] : memref<1x32xf32, #tpu.memory_space<vmem>>, vector<1x32xf32>
      %cst_106 = arith.constant dense<0.000000e+00> : vector<16xf32>
      %220 = vector.multi_reduction <add>, %212, %cst_106 [1] : vector<16x32xf32> to vector<16xf32>
      %221 = vector.shape_cast %220 : vector<16xf32> to vector<16x1xf32>
      %cst_107 = arith.constant 3.200000e+01 : f32
      %222 = vector.broadcast %cst_107 : f32 to vector<16x1xf32>
      %223 = arith.divf %221, %222 : vector<16x1xf32>
      %224 = vector.broadcast %223 : vector<16x1xf32> to vector<16x32xf32>
      %225 = arith.subf %212, %224 : vector<16x32xf32>
      %226 = arith.mulf %225, %225 : vector<16x32xf32>
      %cst_108 = arith.constant dense<0.000000e+00> : vector<16xf32>
      %227 = vector.multi_reduction <add>, %226, %cst_108 [1] : vector<16x32xf32> to vector<16xf32>
      %228 = vector.shape_cast %227 : vector<16xf32> to vector<16x1xf32>
      %cst_109 = arith.constant 3.200000e+01 : f32
      %229 = vector.broadcast %cst_109 : f32 to vector<16x1xf32>
      %230 = arith.divf %228, %229 : vector<16x1xf32>
      %231 = vector.broadcast %223 : vector<16x1xf32> to vector<16x32xf32>
      %232 = arith.subf %212, %231 : vector<16x32xf32>
      %cst_110 = arith.constant 9.99999974E-6 : f32
      %233 = vector.broadcast %cst_110 : f32 to vector<16x1xf32>
      %234 = arith.addf %230, %233 : vector<16x1xf32>
      %235 = math.rsqrt %234 : vector<16x1xf32>
      %236 = vector.broadcast %235 : vector<16x1xf32> to vector<16x32xf32>
      %237 = arith.mulf %232, %236 : vector<16x32xf32>
      %238 = vector.broadcast %218 : vector<1x32xf32> to vector<16x32xf32>
      %239 = arith.mulf %237, %238 : vector<16x32xf32>
      %240 = vector.broadcast %219 : vector<1x32xf32> to vector<16x32xf32>
      %241 = arith.addf %239, %240 : vector<16x32xf32>
      %242 = vector.shape_cast %241 : vector<16x32xf32> to vector<2x8x32xf32>
      %c0_111 = arith.constant 0 : index
      %c0_112 = arith.constant 0 : index
      %c0_113 = arith.constant 0 : index
      %243 = vector.load %arg21[%c0_111, %c0_112, %c0_113] : memref<2x8x32xf32, #tpu.memory_space<vmem>>, vector<2x8x32xf32>
      tpu.vector_store %arg21[%c0_111, %c0_112, %c0_113], %242 {strides = array<i32>} : memref<2x8x32xf32, #tpu.memory_space<vmem>>, vector<2x8x32xf32>,
    } else {
    }
    return
  }
  func.func @transform_0(%arg0: i32, %arg1: i32) -> (i32, i32, i32) {
    %c0_i32 = arith.constant 0 : i32
    %c0_i32_0 = arith.constant 0 : i32
    %c0_i32_1 = arith.constant 0 : i32
    return %arg0, %c0_i32, %c0_i32_0 : i32, i32, i32
  }
  func.func @transform_1(%arg0: i32, %arg1: i32) -> (i32, i32, i32) {
    %c0_i32 = arith.constant 0 : i32
    %c0_i32_0 = arith.constant 0 : i32
    %c0_i32_1 = arith.constant 0 : i32
    return %arg1, %c0_i32, %c0_i32_0 : i32, i32, i32
  }
  func.func @transform_2(%arg0: i32, %arg1: i32) -> (i32, i32, i32) {
    %c0_i32 = arith.constant 0 : i32
    %c0_i32_0 = arith.constant 0 : i32
    %c0_i32_1 = arith.constant 0 : i32
    return %arg1, %c0_i32, %c0_i32_0 : i32, i32, i32
  }
  func.func @transform_3(%arg0: i32, %arg1: i32) -> (i32, i32, i32) {
    %c0_i32 = arith.constant 0 : i32
    %c0_i32_0 = arith.constant 0 : i32
    %c0_i32_1 = arith.constant 0 : i32
    return %arg1, %c0_i32, %c0_i32_0 : i32, i32, i32
  }
  func.func @transform_4(%arg0: i32, %arg1: i32) -> (i32, i32, i32) {
    %c0_i32 = arith.constant 0 : i32
    %c0_i32_0 = arith.constant 0 : i32
    %c0_i32_1 = arith.constant 0 : i32
    return %arg1, %c0_i32, %c0_i32_0 : i32, i32, i32
  }
  func.func @transform_5(%arg0: i32, %arg1: i32) -> (i32, i32, i32) {
    %c0_i32 = arith.constant 0 : i32
    %c0_i32_0 = arith.constant 0 : i32
    %c0_i32_1 = arith.constant 0 : i32
    return %arg1, %c0_i32, %c0_i32_0 : i32, i32, i32
  }
  func.func @transform_6(%arg0: i32, %arg1: i32) -> (i32, i32, i32) {
    %c0_i32 = arith.constant 0 : i32
    %c0_i32_0 = arith.constant 0 : i32
    %c0_i32_1 = arith.constant 0 : i32
    return %arg1, %c0_i32, %c0_i32_0 : i32, i32, i32
  }
  func.func @transform_7(%arg0: i32, %arg1: i32) -> (i32, i32, i32) {
    %c0_i32 = arith.constant 0 : i32
    %c0_i32_0 = arith.constant 0 : i32
    %c0_i32_1 = arith.constant 0 : i32
    return %arg1, %c0_i32, %c0_i32_0 : i32, i32, i32
  }
  func.func @transform_8(%arg0: i32, %arg1: i32) -> (i32, i32, i32) {
    %c0_i32 = arith.constant 0 : i32
    %c0_i32_0 = arith.constant 0 : i32
    %c0_i32_1 = arith.constant 0 : i32
    return %arg1, %c0_i32, %c0_i32_0 : i32, i32, i32
  }
  func.func @transform_9(%arg0: i32, %arg1: i32) -> (i32, i32, i32) {
    %c0_i32 = arith.constant 0 : i32
    %c0_i32_0 = arith.constant 0 : i32
    %c0_i32_1 = arith.constant 0 : i32
    return %arg1, %c0_i32, %c0_i32_0 : i32, i32, i32
  }
  func.func @transform_10(%arg0: i32, %arg1: i32) -> (i32, i32, i32) {
    %c0_i32 = arith.constant 0 : i32
    %c0_i32_0 = arith.constant 0 : i32
    %c0_i32_1 = arith.constant 0 : i32
    return %arg1, %c0_i32, %c0_i32_0 : i32, i32, i32
  }
  func.func @transform_11(%arg0: i32, %arg1: i32) -> (i32, i32, i32) {
    %c0_i32 = arith.constant 0 : i32
    %c0_i32_0 = arith.constant 0 : i32
    %c0_i32_1 = arith.constant 0 : i32
    return %arg1, %c0_i32, %c0_i32_0 : i32, i32, i32
  }
  func.func @transform_12(%arg0: i32, %arg1: i32) -> (i32, i32, i32) {
    %c0_i32 = arith.constant 0 : i32
    %c0_i32_0 = arith.constant 0 : i32
    %c0_i32_1 = arith.constant 0 : i32
    return %arg1, %c0_i32, %c0_i32_0 : i32, i32, i32
  }
  func.func @transform_13(%arg0: i32, %arg1: i32) -> (i32, i32, i32) {
    %c0_i32 = arith.constant 0 : i32
    %c0_i32_0 = arith.constant 0 : i32
    %c0_i32_1 = arith.constant 0 : i32
    return %arg1, %c0_i32, %c0_i32_0 : i32, i32, i32
  }
  func.func @transform_14(%arg0: i32, %arg1: i32) -> (i32, i32, i32) {
    %c0_i32 = arith.constant 0 : i32
    %c0_i32_0 = arith.constant 0 : i32
    %c0_i32_1 = arith.constant 0 : i32
    return %arg1, %c0_i32, %c0_i32_0 : i32, i32, i32
  }
  func.func @transform_15(%arg0: i32, %arg1: i32) -> (i32, i32, i32) {
    %c0_i32 = arith.constant 0 : i32
    %c0_i32_0 = arith.constant 0 : i32
    %c0_i32_1 = arith.constant 0 : i32
    return %arg1, %c0_i32, %c0_i32_0 : i32, i32, i32
  }
  func.func @transform_16(%arg0: i32, %arg1: i32) -> (i32, i32, i32) {
    %c0_i32 = arith.constant 0 : i32
    %c0_i32_0 = arith.constant 0 : i32
    %c0_i32_1 = arith.constant 0 : i32
    return %arg1, %c0_i32, %c0_i32_0 : i32, i32, i32
  }
  func.func @transform_17(%arg0: i32, %arg1: i32) -> (i32, i32) {
    %c0_i32 = arith.constant 0 : i32
    %c0_i32_0 = arith.constant 0 : i32
    %c0_i32_1 = arith.constant 0 : i32
    return %c0_i32, %c0_i32_0 : i32, i32
  }
  func.func @transform_18(%arg0: i32, %arg1: i32) -> (i32, i32) {
    %c0_i32 = arith.constant 0 : i32
    %c0_i32_0 = arith.constant 0 : i32
    %c0_i32_1 = arith.constant 0 : i32
    return %c0_i32, %c0_i32_0 : i32, i32
  }
  func.func @transform_19(%arg0: i32, %arg1: i32) -> (i32, i32, i32) {
    %c0_i32 = arith.constant 0 : i32
    %c0_i32_0 = arith.constant 0 : i32
    %c0_i32_1 = arith.constant 0 : i32
    return %arg0, %c0_i32, %c0_i32_0 : i32, i32, i32
  }
}

</mosaic_0001>

<bundles_post_ra>
// kernel: tpu_custom_call.1
= control target key start
LH: loop header
LB: loop body
LE: loop exit
PB: predicated region body
PF: predicated region fallthrough
CT: control target
= control target key end

     0   :  { %s3754_s0 = inlined_call_operand.vmem [shape: f32[4,8,32], index: 0, kind: input, shape index: {}]   ;;  %s3755_s1 = inlined_call_operand.vmem [shape: f32[2,1,32], index: 1, kind: input, shape index: {}]   ;;  %s3756_s2 = inlined_call_operand.vmem [shape: f32[2,1,32], index: 2, kind: input, shape index: {}]   ;;  %s3757_s3 = inlined_call_operand.vmem [shape: bf16[2,32,96], index: 3, kind: input, shape index: {}]   ;;  %s3758_s4 = inlined_call_operand.vmem [shape: f32[2,1,96], index: 4, kind: input, shape index: {}]   ;;  %s3759_s5 = inlined_call_operand.vmem [shape: f32[2,1,96], index: 5, kind: input, shape index: {}]   ;;  %s3760_s6 = inlined_call_operand.vmem [shape: bf16[2,32,32], index: 6, kind: input, shape index: {}]   ;;  %s3761_s7 = inlined_call_operand.vmem [shape: f32[2,1,32], index: 7, kind: input, shape index: {}]   ;;  %s3762_s8 = inlined_call_operand.vmem [shape: f32[2,1,32], index: 8, kind: input, shape index: {}]   ;;  %s3763_s9 = inlined_call_operand.vmem [shape: f32[2,1,32], index: 9, kind: input, shape index: {}]   ;;  %s3764_s10 = inlined_call_operand.vmem [shape: f32[2,1,32], index: 10, kind: input, shape index: {}]   ;;  %s3765_s11 = inlined_call_operand.vmem [shape: bf16[2,32,128], index: 11, kind: input, shape index: {}]   ;;  %s3766_s12 = inlined_call_operand.vmem [shape: f32[2,1,128], index: 12, kind: input, shape index: {}]   ;;  %s3767_s13 = inlined_call_operand.vmem [shape: f32[2,1,128], index: 13, kind: input, shape index: {}]   ;;  %s3768_s14 = inlined_call_operand.vmem [shape: bf16[2,128,32], index: 14, kind: input, shape index: {}]   ;;  %s3769_s15 = inlined_call_operand.vmem [shape: f32[2,1,32], index: 15, kind: input, shape index: {}]   ;;  %s3770_s16 = inlined_call_operand.vmem [shape: f32[2,1,32], index: 16, kind: input, shape index: {}]   ;;  %s3771_s17 = inlined_call_operand.vmem [shape: f32[1,32], index: 17, kind: input, shape index: {}]   ;;  %s3772_s18 = inlined_call_operand.vmem [shape: f32[1,32], index: 18, kind: input, shape index: {}]   ;;  %s3773_s19 = inlined_call_operand.hbm [shape: f32[4,8,32], index: 19, kind: output, shape index: {}]  }
   0x1   :  { %3789 = sst [smem:[#allocation20_spill]] %s3754_s0 }
   0x2   :  { %3790 = sst [smem:[#allocation21_spill]] %s3755_s1 }
   0x3   :  { %3791 = sst [smem:[#allocation22_spill]] %s3756_s2 }
   0x4   :  { %3792 = sst [smem:[#allocation23_spill]] %s3757_s3 }
   0x5   :  { %3793 = sst [smem:[#allocation24_spill]] %s3760_s6 }
   0x6   :  { %3794 = sst [smem:[#allocation25_spill]] %s3763_s9 }
   0x7   :  { %3795 = sst [smem:[#allocation26_spill]] %s3764_s10 }
   0x8   :  { %3796 = sst [smem:[#allocation27_spill]] %s3765_s11 }
   0x9   :  { %3797 = sst [smem:[#allocation28_spill]] %s3768_s14 }
   0xa   :  { %3798 = sst [smem:[#allocation29_spill]] %s3769_s15 }
   0xb   :  { %3799 = sst [smem:[#allocation30_spill]] %s3770_s16 }
   0xc   :  { %3800 = sst [smem:[#allocation31_spill]] %s3771_s17 }
   0xd   :  { %3801 = sst [smem:[#allocation32_spill]] %s3772_s18 }
   0xe   :  { %3802 = sst [smem:[#allocation33_spill]] %s3773_s19 }
   0xf   :  { %24 = vsyncpa [#allocation5], 0 }
  0x10   :  { %26 = vsyncpa [#allocation5 + $0x1], 0  ;;  %s3245_s0 = smov 0   ;;  %s3247_s30 = smov 0  }
  0x11   :  { %s3249_s20 = smov 0   ;;  %s3251_s21 = smov 0  }
  0x12   :  { %s3253_s1 = smov 0   ;;  %s3255_s22 = smov 0  }
  0x13   :  { %s3257_s2 = smov 0   ;;  %s3259_s23 = smov 0  }
  0x14 LB: > { %3803 = sst [smem:[#allocation7_spill]] %s3096_s0  ;;  %s2596_s24 = sadd.s32 4294967295, %s3124_s23   ;;  %s3124_s23 = sphi %s3259_s23, %s32_s23   ;;  %s3120_s2 = sphi %s3257_s2, %s3861_s2   ;;  %s3116_s22 = sphi %s3255_s22, %s3860_s22   ;;  %s3112_s1 = sphi %s3253_s1, %s3859_s1   ;;  %s3108_s21 = sphi %s3251_s21, %s3858_s21   ;;  %s3104_s20 = sphi %s3249_s20, %s3857_s20   ;;  %s3100_s30 = sphi %s3247_s30, %s3856_s30   ;;  %s3096_s0 = sphi %s3245_s0, %s3855_s0  }
  0x15   : > { %3804 = sst [smem:[#allocation8_spill]] %s3100_s30  ;;  %s2597_s25 = sadd.s32 4294967294, %s3124_s23  }
  0x16   : > { %3805 = sst [smem:[#allocation9_spill]] %s3104_s20  ;;  %s41_s3 = sadd.s32 1, %s3116_s22 }
  0x17   : > { %3806 = sst [smem:[#allocation10_spill]] %s3108_s21  ;;  %p42_p0 = scmp.ge.s32.totalorder %s41_s3, 2 }
  0x18   : > { %3807 = sst [smem:[#allocation11_spill]] %s3112_s1  ;;  %s44_s26 = sadd.s32 1, %s3120_s2 }
  0x19   : > { %3808 = sst [smem:[#allocation12_spill]] %s3116_s22  ;;  %p545_p1 = scmp.ne.s32.totalorder %s3104_s20, %s3100_s30 }
  0x1a   : > { %3809 = sst [smem:[#allocation13_spill]] %s3120_s2  ;;  %p546_p2 = scmp.eq.s32.totalorder %s2596_s24, 3 }
  0x1b   : > { %3810 = sst [smem:[#allocation14_spill]] %s3124_s23  ;;  %s3863_s3 = smov (%p42_p0, %s41_s3), 0 }
  0x1c   : > { %3811 = sst [smem:[#allocation15_spill]] %s3863_s3  ;;  %s3865_s26 = smov (!%p42_p0, %s44_s26), %s3120_s2 }
  0x1d   : > { %p3294_p3 = por %p546_p2, %p545_p1  ;;  %p551_p4 = scmp.ne.s32.totalorder %s3100_s30, %s3096_s0 }
  0x1e   : > { %p46_p5 = scmp.ge.s32.totalorder %s3865_s26, 2  ;;  %p552_p6 = scmp.eq.s32.totalorder %s2597_s25, 3 }
  0x1f   : > { %s3812_s27 = scalar_select %p3294_p3, 1, 0 }
  0x20   : > { %p2600_p7 = scmp.ge.s32.totalorder %s3124_s23, 1  ;;  %p689_p8 = scmp.lt.s32.totalorder %s3124_s23, 5 }
  0x21   : > { %3813 = sst [smem:[#allocation16_spill]] %s3812_s27  ;;  %s3867_s26 = smov (%p46_p5, %s3865_s26), 0 }
  0x22   : > { %3814 = sst [smem:[#allocation17_spill]] %s3867_s26  ;;  %p3304_p9 = por %p552_p6, %p551_p4 }
  0x23   : > { %p690_p10 = pnand %p2600_p7, %p689_p8  ;;  %s532_s29 = ssub.s32 %s3120_s2, %s3867_s26 }
  0x24   : > { %s3815_s28 = scalar_select %p3304_p9, 1, 0 }
  0x25   : > { %s535_s24 = sadd.s32 1, %s3104_s20  ;;  %p533_p11 = scmp.eq.s32.totalorder %s532_s29, 0 }
  0x26   : > { %3816 = sst [smem:[#allocation18_spill]] %s3815_s28  ;;  %693 = sbr.rel (%p690_p10) target bundleno = 4569 (0x11d9), region = 96 }
  0x27   : > { %s3312_s3 = scalar_select %p533_p11, %s3104_s20, %s535_s24  }
  0x28   : > { %s3778_s25 = sand.u32 (!%p690_p10), 1, %s3100_s30   ;;  %s2602_s22 = sshll.u32 (!%p690_p10), %s3112_s1, 1 }
  0x29   : > { %3817 = sst [smem:[#allocation19_spill]] %s3312_s3  ;;  %s2601_s0 = sshll.u32 (!%p690_p10), %s3778_s25, 4 }
  0x2a   : > { %p802_p12 = scmp.lt.s32.totalorder (!%p690_p10), %s2602_s22, 3  ;;  %p807_p13 = scmp.lt.s32.totalorder (!%p690_p10), %s3108_s21, 1 }
  0x2b   : > { %s3818_s25 = sld [smem:[#allocation20_spill]] (!%p690_p10)  ;;  %s3821_s15 = sld [smem:[#allocation23_spill]] (!%p690_p10) }
  0x2c   : > { %s3822_s6 = sld [smem:[#allocation24_spill]] (!%p690_p10)  ;;  %s3825_s11 = sld [smem:[#allocation27_spill]] (!%p690_p10) }
  0x2d   : > { %s3869_s22 = smov (!%p802_p12, %s2602_s22), 3  ;;  %s3826_s26 = sld [smem:[#allocation28_spill]] }
  0x2e   : > { %s3320_s28 = scalar_select %p807_p13, %s3108_s21, 1 }
  0x2f   : > { %s2603_s29 = sshll.u32 %s3869_s22, 3  ;;  %s3827_s24 = sld [smem:[#allocation29_spill]] }
  0x30   : > { %s2675_s17 = sshll.u32 %s3320_s28, 4  ;;  %s848_s27 = scalar_lea.vmem %s3766_s12, %s3320_s28 }
  0x31   : > { %s805_s2 = scalar_lea.vmem %s3818_s25, %s2603_s29  ;;  %s3337_s22 = scalar_lea.vmem %s3821_s15, %s2675_s17 }
  0x32   : > { %s3350_s30 = scalar_lea.vmem %s3822_s6, %s2675_s17  ;;  %s3371_s3 = scalar_lea.vmem %s3825_s11, %s2675_s17 }
  0x33   : > { %s851_s15 = scalar_lea.vmem %s3767_s13, %s3320_s28  ;;  %s2678_s21 = sshll.u32 %s3320_s28, 6 }
  0x34   : > { %s3385_s9 = scalar_lea.vmem %s3826_s26, %s2678_s21  ;;  %s3828_s11 = sld [smem:[#allocation30_spill]] }
  0x35   : > { %s859_s20 = scalar_lea.vmem %s3827_s24, %s3320_s28  ;;  %s3395_s6 = scalar_lea.vmem [#allocation4], %s2601_s0 }
  0x36   : > { %s3829_s1 = sld [smem:[#allocation10_spill]] }
  0x3a   : > { %s862_s10 = scalar_lea.vmem %s3828_s11, %s3320_s28 }
  0x3c   : > { %p2612_p0 = scmp.ne.s32.totalorder %s3829_s1, 0 }
  0x3d   : > { %v869_v0 = vld [vmem:[%s805_s2] sm:$0xff] (!%p2612_p0)  ;;  %vm871_vm0 = vcmask (!%p2612_p0), 261120   ;;  %v870_v1 = vld [vmem:[%s805_s2 + $0x8] sm:$0xff] (!%p2612_p0) }
  0x3e   : > { %868 = sbr.rel (%p2612_p0) target bundleno = 69 (0x45), region = 100  ;;  %872 = vst.msk [vmem:[#allocation2] sm:$0xff] (!%p2612_p0), %vm871_vm0, %v869_v0  ;;  %873 = vst.msk [vmem:[#allocation2 + $0x8] sm:$0xff] (!%p2612_p0), %vm871_vm0, %v870_v1 }
  0x45 PF: > { %v3398_v2 = vld [vmem:[#allocation2] sm:$0xff]  ;;  %vm884_vm1 = vcmask 261120   ;;  %v3400_v3 = vld [vmem:[#allocation2 + $0x8] sm:$0xff]  ;;  %v3126_v17 = vmov 0.0   ;;  %vm3127_vm2 = vmmov 0   ;;  %s3830_s0 = sld [smem:[#allocation21_spill]]  ;;  %s3834_s14 = scalar_lea.vmem %s3758_s4, %s3320_s28  ;;  %v876_v52 = vlaneseq }
  0x46   : > { %v885_v4 = vsel %vm884_vm1, %v3398_v2, 0.0  ;;  %v888_v5 = vsel %vm884_vm1, %v3400_v3, 0.0  ;;  %v2967_v16 = vld [vmem:[%s3337_s22] sm:$0xff]   ;;  %2738 = vmatprep.subr.bf16.mxu0 %v3126_v17  ;;  %2758 = vmatprep.subr.bf16.mxu1 %v3126_v17  ;;  %v2968_v18 = vld [vmem:[%s3337_s22 + $0x8] sm:$0xff]   ;;  %s3832_s26 = sld [smem:[#allocation22_spill]]  ;;  %s3835_s17 = scalar_lea.vmem %s3759_s5, %s3320_s28  ;;  %vm1015_vm3 = vcmask 64512  }
  0x47   : > { %886 = vadd.xlane.f32.xlu0 %v885_v4  ;;  %2739 = vmatpush3.bf16.msra.mxu0 %v2967_v16  ;;  %v2618_v36 = vld [vmem:[%s3834_s14] ss:$0 sm:$0xff]  ;;  %s3128_s23 = smov 96   ;;  %v877_v53 = vshrl.u32 %v876_v52, 7  ;;  %v879_v54 = vand.u32 127, %v876_v52  ;;  %v3129_v55 = vmov -inf  }
  0x48   : > { %2742 = vmatprep.mubr.msk.bf16.mxu0 %vm3127_vm2, %v3126_v17  ;;  %2740 = vmatprep.subr.bf16.mxu0 %v3126_v17  ;;  %v2619_v38 = vld [vmem:[%s3835_s17] ss:$0 sm:$0xff]  ;;  %s3130_s1 = smov 64   ;;  %s3131_s11 = smov 88   ;;  %vm1139_vm5 = vcmask 1043456   ;;  %vm1233_vm6 = vcmask 60416  }
  0x49   : > { %2760 = vmatprep.mubr.msk.bf16.mxu1 %vm3127_vm2, %v3126_v17  ;;  %vm880_vm4 = vcmp.le.s32.totalorder %v879_v54, %v877_v53  ;;  %s3132_s18 = smov 120   ;;  %s3135_s22 = smov 112   ;;  %vm1470_vm7 = vcmask 126016   ;;  %vm1707_vm8 = vcmask 191616   ;;  %vm1944_vm9 = vcmask 257216  }
  0x4a   : > { %v3461_v56 = vsel %vm880_vm4, 0.0, %v3129_v55  ;;  %s3136_s21 = smov 48   ;;  %s3139_s16 = smov 40  }
  0x4b   : > { %889 = vadd.xlane.f32.xlu0 %v888_v5  ;;  %2741 = vmatpush3.bf16.msra.mxu0 %v2968_v18  ;;  %s3831_s2 = scalar_lea.vmem %s3830_s0, %s3320_s28  ;;  %s3133_s0 = smov 56  }
  0x4c   : > { %2746 = vmatprep.subr.bf16.mxu0 %v3126_v17  ;;  %v2613_v27 = vld [vmem:[%s3831_s2] ss:$0 sm:$0xff]  ;;  %s3833_s24 = scalar_lea.vmem %s3832_s26, %s3320_s28  ;;  %s3134_s2 = smov 80  }
  0x4d   : > { %v2614_v31 = vld [vmem:[%s3833_s24] ss:$0 sm:$0xff]  ;;  %s3137_s26 = smov 72   ;;  %s3138_s24 = smov 104  }
  0x4e   : > { %s3140_s19 = smov 8   ;;  %s3141_s14 = smov 16  }
  0x4f   : > { %s3142_s25 = smov 24   ;;  %s3836_s17 = scalar_lea.vmem %s3761_s7, %s3320_s28 }
  0xd4   : > { %v887_v6 = vpop.xlane.xlu0 %886 }
  0xd5   : > { %v892_v7 = vmul.f32 0.03125, %v887_v6 }
  0xd7   : > { %v894_v8 = vsub.f32 %v3398_v2, %v892_v7 }
  0xd8   : > { %v890_v9 = vpop.xlane.xlu0 %889 }
  0xd9   : > { %v893_v10 = vmul.f32 0.03125, %v890_v9  ;;  %v896_v11 = vmul.f32 %v894_v8, %v894_v8 }
  0xdb   : > { %v895_v12 = vsub.f32 %v3400_v3, %v893_v10  ;;  %v898_v13 = vsel %vm884_vm1, %v896_v11, 0.0 }
  0xdc   : > { %899 = vadd.xlane.f32.xlu1 %v898_v13 }
  0xdd   : > { %v897_v14 = vmul.f32 %v895_v12, %v895_v12 }
  0xdf   : > { %v901_v15 = vsel %vm884_vm1, %v897_v14, 0.0 }
  0xe0   : > { %902 = vadd.xlane.f32.xlu1 %v901_v15 }
 0x169   : > { %v900_v19 = vpop.xlane.xlu1 %899 }
 0x16a   : > { %v904_v20 = vmul.f32 0.03125, %v900_v19 }
 0x16c   : > { %v906_v21 = vadd.f32 1e-05, %v904_v20 }
 0x16d   : > { %v903_v22 = vpop.xlane.xlu1 %902 }
 0x16e   : > { %2982 = vrsqrt.f32 %v906_v21  ;;  %v905_v23 = vmul.f32 0.03125, %v903_v22 }
 0x170   : > { %v907_v24 = vadd.f32 1e-05, %v905_v23 }
 0x172   : > { %2984 = vrsqrt.f32 %v907_v24 }
 0x178   : > { %v2983_v25 = vpop.eup %2982 }
 0x179   : > { %v910_v26 = vmul.f32 %v2983_v25, %v894_v8 }
 0x17b   : > { %v918_v30 = vmul.f32 %v2613_v27, %v910_v26 }
 0x17c   : > { %v2985_v28 = vpop.eup %2984 }
 0x17d   : > { %v911_v29 = vmul.f32 %v2985_v28, %v895_v12  ;;  %v926_v33 = vadd.f32 %v2614_v31, %v918_v30 }
 0x17f   : > { %v919_v32 = vmul.f32 %v2613_v27, %v911_v29 }
 0x181   : > { %v927_v34 = vadd.f32 %v2614_v31, %v919_v32 }
 0x183   : > { %v928_v35 = vpack.c.bf16 %v927_v34, %v926_v33 }
 0x185   : > { %2743 = vmatmul.mubr.msk.bf16.vlgmr.msra.gmra.mrb[0].mxu0 %vm884_vm1, %v928_v35 }
 0x186   : > { %2748 = vmatprep.mubr.msk.bf16.mxu0 %vm3127_vm2, %v3126_v17 }
 0x258   : > { %v982_v37 = vpop.f32.mrb[0].mxu0 }
 0x259   : > { %v996_v39 = vmul.f32 %v2618_v36, %v982_v37  ;;  %v2744_v40 = vpop.f32.mrb[1].mxu0 }
 0x25a   : > { %v985_v41 = vpop.f32.mrb[2].mxu0 }
 0x25b   : > { %v1005_v42 = vadd.f32 %v2619_v38, %v996_v39  ;;  %v997_v43 = vmul.f32 %v2618_v36, %v985_v41  ;;  %v2745_v44 = vpop.f32.mrb[3].mxu0 }
 0x25d   : > { %v3443_v45 = vpack.c.bf16 %v1005_v42, %v1005_v42  ;;  %v1006_v46 = vadd.f32 %v2619_v38, %v997_v43 }
 0x25f   : > { %v3445_v47 = vpack.c.bf16 %v1006_v46, %v1006_v46  ;;  %1013 = vrot.lane.b32.xlu0 %v3443_v45, %s3128_s23 }
 0x261   : > { %1062 = vrot.lane.b32.xlu1 %v3445_v47, %s3128_s23 }
 0x2d1   : > { %v1014_v48 = vpop.permute.xlu0 %1013 }
 0x2d2   : > { %v1020_v49 = vsel %vm1015_vm3, %v1014_v48, 0 }
 0x2d3   : > { %2747 = vmatpush3.bf16.xpose.msra.mxu0 %v1020_v49  ;;  %v1063_v50 = vpop.permute.xlu1 %1062 }
 0x2d4   : > { %2752 = vmatprep.subr.bf16.mxu0 %v3126_v17  ;;  %v1068_v51 = vsel %vm1015_vm3, %v1063_v50, 0 }
 0x2da   : > { %2749 = vmatmul.mubr.msk.bf16.vlgmr.msra.gmra.mrb[4].mxu0 %vm1015_vm3, %v3443_v45 }
 0x2db   : > { %2753 = vmatpush3.bf16.xpose.msra.mxu0 %v1068_v51  ;;  %2754 = vmatprep.mubr.msk.bf16.mxu0 %vm3127_vm2, %v3126_v17 }
 0x2dc   : > { %2764 = vmatprep.subr.bf16.mxu0 %v3126_v17 }
 0x2e2   : > { %2755 = vmatmul.mubr.msk.bf16.vlgmr.msra.gmra.mrb[8].mxu0 %vm1015_vm3, %v3445_v47 }
 0x2e3   : > { %2766 = vmatprep.mubr.msk.bf16.mxu0 %vm3127_vm2, %v3126_v17 }
 0x3ad   : > { %v1056_v57 = vpop.f32.mrb[4].mxu0 }
 0x3ae   : > { %v1057_v58 = vadd.f32 %v1056_v57, %v3461_v56  ;;  %v2750_v59 = vpop.f32.mrb[5].mxu0 }
 0x3af   : > { %v1059_v60 = vpop.f32.mrb[6].mxu0 }
 0x3b0   : > { %v2751_v61 = vpop.f32.mrb[7].mxu0  ;;  %v1110_v62 = vsel %vm1015_vm3, %v1057_v58, -inf }
 0x3b1   : > { %1111 = vmax.xlane.f32.xlu1 %v1110_v62 }
 0x3b5   : > { %v1104_v63 = vpop.f32.mrb[8].mxu0 }
 0x3b6   : > { %v1105_v0 = vadd.f32 %v1104_v63, %v3461_v56  ;;  %v2756_v1 = vpop.f32.mrb[9].mxu0 }
 0x3b7   : > { %v1107_v4 = vpop.f32.mrb[10].mxu0 }
 0x3b8   : > { %v2757_v5 = vpop.f32.mrb[11].mxu0  ;;  %v1113_v6 = vsel %vm1015_vm3, %v1105_v0, -inf }
 0x3b9   : > { %1114 = vmax.xlane.f32.xlu0 %v1113_v6 }
 0x3c2   : > { %1183 = vrot.lane.b32.xlu1 %v3445_v47, %s3130_s1 }
 0x3c6   : > { %1238 = vrot.lane.b32.xlu1 %v3443_v45, %s3131_s11 }
 0x43e   : > { %v1112_v7 = vpop.xlane.xlu1 %1111 }
 0x43f   : > { %v1116_v8 = vsub.f32 %v1057_v58, %v1112_v7 }
 0x441   : > { %v1118_v9 = vmul.f32 1.442695, %v1116_v8 }
 0x442   : > { %v1184_v10 = vpop.permute.xlu1 %1183 }
 0x443   : > { %2986 = vpow2.f32 %v1118_v9  ;;  %v1189_v11 = vsel %vm1139_vm5, %v1184_v10, 0 }
 0x444   : > { %2765 = vmatpush3.bf16.msra.mxu0 %v1189_v11 }
 0x445   : > { %2776 = vmatprep.subr.bf16.mxu0 %v3126_v17 }
 0x446   : > { %v1115_v12 = vpop.xlane.xlu0 %1114  ;;  %v1239_v21 = vpop.permute.xlu1 %1238 }
 0x447   : > { %v1117_v13 = vsub.f32 %v1105_v0, %v1115_v12  ;;  %v1244_v28 = vsel %vm1015_vm3, %v1239_v21, 0 }
 0x449   : > { %v1120_v14 = vmul.f32 1.442695, %v1117_v13 }
 0x44b   : > { %2988 = vpow2.f32 %v1120_v14 }
 0x44d   : > { %v2987_v15 = vpop.eup %2986 }
 0x44e   : > { %v1122_v16 = vsel %vm1015_vm3, %v2987_v15, 0.0 }
 0x44f   : > { %1123 = vadd.xlane.f32.xlu0 %v1122_v16 }
 0x455   : > { %v2989_v18 = vpop.eup %2988 }
 0x456   : > { %v1125_v19 = vsel %vm1015_vm3, %v2989_v18, 0.0 }
 0x457   : > { %1126 = vadd.xlane.f32.xlu1 %v1125_v19 }
 0x465   : > { %1134 = vrot.lane.b32.xlu0 %v3443_v45, %s3130_s1 }
 0x468   : > { %1288 = vrot.lane.b32.xlu1 %v3445_v47, %s3131_s11  ;;  %s3837_s11 = scalar_lea.vmem %s3762_s8, %s3320_s28 }
 0x469   : > { %1236 = vrot.lane.b32.xlu0 %v3443_v45, %s3132_s18 }
 0x46c   : > { %1286 = vrot.lane.b32.xlu1 %v3445_v47, %s3132_s18 }
 0x4dc   : > { %v1124_v20 = vpop.xlane.xlu0 %1123 }
 0x4dd   : > { %2990 = vrcp.f32 %v1124_v20 }
 0x4e0   : > { %v1135_v22 = vpop.permute.xlu0 %1134 }
 0x4e1   : > { %v1141_v23 = vsel %vm1139_vm5, %v1135_v22, 0 }
 0x4e2   : > { %2759 = vmatpush3.bf16.msra.mxu1 %v1141_v23 }
 0x4e3   : > { %2770 = vmatprep.subr.bf16.mxu1 %v3126_v17 }
 0x4e4   : > { %v1127_v24 = vpop.xlane.xlu1 %1126  ;;  %v1237_v33 = vpop.permute.xlu0 %1236 }
 0x4e5   : > { %2992 = vrcp.f32 %v1127_v24 }
 0x4e7   : > { %v2991_v25 = vpop.eup %2990 }
 0x4e8   : > { %v1130_v26 = vmul.f32 %v2991_v25, %v2987_v15  ;;  %v1289_v31 = vpop.permute.xlu1 %1288 }
 0x4e9   : > { %v1294_v34 = vsel %vm1015_vm3, %v1289_v31, 0 }
 0x4ea   : > { %v1132_v27 = vpack.c.bf16 %v1130_v26, %v1130_v26 }
 0x4ec   : > { %2761 = vmatmul.mubr.msk.bf16.vlgmr.msra.gmra.mrb[0].mxu1 %vm1015_vm3, %v1132_v27  ;;  %v1287_v35 = vpop.permute.xlu1 %1286 }
 0x4ed   : > { %2771 = vmatpush3.bf16.xpose.msra.mxu1 %v1244_v28  ;;  %2772 = vmatprep.mubr.msk.bf16.mxu1 %vm3127_vm2, %v3126_v17 }
 0x4ee   : > { %2782 = vmatprep.subr.bf16.mxu1 %v3126_v17 }
 0x4ef   : > { %v2993_v29 = vpop.eup %2992 }
 0x4f0   : > { %v1131_v30 = vmul.f32 %v2993_v29, %v2989_v18 }
 0x4f2   : > { %v1133_v32 = vpack.c.bf16 %v1131_v30, %v1131_v30 }
 0x4f4   : > { %2767 = vmatmul.mubr.msk.bf16.vlgmr.msra.gmra.mrb[12].mxu0 %vm1015_vm3, %v1133_v32  ;;  %2773 = vmatmul.mubr.msk.bf16.vlgmr.msra.gmra.mrb[4].mxu1 %vm1015_vm3, %v1237_v33 }
 0x4f5   : > { %2777 = vmatpush3.bf16.xpose.msra.mxu0 %v1294_v34  ;;  %2778 = vmatprep.mubr.msk.bf16.mxu0 %vm3127_vm2, %v3126_v17 }
 0x4f6   : > { %2788 = vmatprep.subr.bf16.mxu0 %v3126_v17  ;;  %2784 = vmatprep.mubr.msk.bf16.mxu1 %vm3127_vm2, %v3126_v17 }
 0x4fc   : > { %2779 = vmatmul.mubr.msk.bf16.vlgmr.msra.gmra.mrb[16].mxu0 %vm1015_vm3, %v1287_v35 }
 0x4fd   : > { %2790 = vmatprep.mubr.msk.bf16.mxu0 %vm3127_vm2, %v3126_v17 }
 0x5bf   : > { %v1177_v36 = vpop.f32.mrb[0].mxu1 }
 0x5c0   : > { %v1231_v37 = vpack.c.bf16 %v1177_v36, %v1177_v36  ;;  %v2762_v38 = vpop.f32.mrb[1].mxu1 }
 0x5c1   : > { %v1180_v39 = vpop.f32.mrb[2].mxu1 }
 0x5c2   : > { %1234 = vst.msk [vmem:[#allocation3] sm:$0xf] %vm1233_vm6, %v1231_v37  ;;  %v2763_v40 = vpop.f32.mrb[3].mxu1 }
 0x5c7   : > { %v1225_v41 = vpop.f32.mrb[12].mxu0  ;;  %v1280_v42 = vpop.f32.mrb[4].mxu1 }
 0x5c8   : > { %v1232_v43 = vpack.c.bf16 %v1225_v41, %v1225_v41  ;;  %v1281_v44 = vadd.f32 %v1280_v42, %v3461_v56  ;;  %v2768_v46 = vpop.f32.mrb[13].mxu0  ;;  %v2774_v48 = vpop.f32.mrb[5].mxu1 }
 0x5c9   : > { %v1228_v49 = vpop.f32.mrb[14].mxu0  ;;  %v1283_v50 = vpop.f32.mrb[6].mxu1 }
 0x5ca   : > { %1235 = vst.msk [vmem:[#allocation3 + $0x4] sm:$0xf] %vm1233_vm6, %v1232_v43  ;;  %v2769_v51 = vpop.f32.mrb[15].mxu0  ;;  %v2775_v52 = vpop.f32.mrb[7].mxu1  ;;  %v1336_v53 = vsel %vm1015_vm3, %v1281_v44, -inf }
 0x5cb   : > { %1337 = vmax.xlane.f32.xlu0 %v1336_v53 }
 0x5cf   : > { %v1330_v54 = vpop.f32.mrb[16].mxu0 }
 0x5d0   : > { %v1331_v55 = vadd.f32 %v1330_v54, %v3461_v56  ;;  %v2780_v57 = vpop.f32.mrb[17].mxu0 }
 0x5d1   : > { %v1333_v58 = vpop.f32.mrb[18].mxu0 }
 0x5d2   : > { %v2781_v59 = vpop.f32.mrb[19].mxu0  ;;  %v1339_v60 = vsel %vm1015_vm3, %v1331_v55, -inf }
 0x5d3   : > { %1340 = vmax.xlane.f32.xlu1 %v1339_v60 }
 0x5e4   : > { %1408 = vrot.lane.b32.xlu1 %v3445_v47, %s3133_s0 }
 0x5e8   : > { %1475 = vrot.lane.b32.xlu1 %v3443_v45, %s3134_s2 }
 0x5ec   : > { %1525 = vrot.lane.b32.xlu1 %v3445_v47, %s3134_s2  ;;  %s3838_s2 = sld [smem:[#allocation25_spill]] }
 0x5f0   : > { %1523 = vrot.lane.b32.xlu1 %v3445_v47, %s3135_s22 }
 0x658   : > { %v1338_v61 = vpop.xlane.xlu0 %1337 }
 0x659   : > { %v1342_v62 = vsub.f32 %v1281_v44, %v1338_v61 }
 0x65b   : > { %v1344_v63 = vmul.f32 1.442695, %v1342_v62 }
 0x65d   : > { %2994 = vpow2.f32 %v1344_v63 }
 0x660   : > { %v1341_v0 = vpop.xlane.xlu1 %1340 }
 0x661   : > { %v1343_v1 = vsub.f32 %v1331_v55, %v1341_v0 }
 0x663   : > { %v1346_v4 = vmul.f32 1.442695, %v1343_v1 }
 0x664   : > { %v1409_v5 = vpop.permute.xlu1 %1408 }
 0x665   : > { %2996 = vpow2.f32 %v1346_v4  ;;  %v1414_v6 = vsel %vm1139_vm5, %v1409_v5, 0 }
 0x666   : > { %2789 = vmatpush3.bf16.msra.mxu0 %v1414_v6 }
 0x667   : > { %v2995_v7 = vpop.eup %2994  ;;  %2800 = vmatprep.subr.bf16.mxu0 %v3126_v17 }
 0x668   : > { %v1348_v8 = vsel %vm1015_vm3, %v2995_v7, 0.0  ;;  %v1476_v19 = vpop.permute.xlu1 %1475 }
 0x669   : > { %1349 = vadd.xlane.f32.xlu0 %v1348_v8  ;;  %v1481_v23 = vsel %vm1015_vm3, %v1476_v19, 0 }
 0x66c   : > { %v1526_v22 = vpop.permute.xlu1 %1525 }
 0x66d   : > { %v1531_v25 = vsel %vm1015_vm3, %v1526_v22, 0 }
 0x66f   : > { %v2997_v9 = vpop.eup %2996 }
 0x670   : > { %v1351_v10 = vsel %vm1015_vm3, %v2997_v9, 0.0  ;;  %v1524_v27 = vpop.permute.xlu1 %1523 }
 0x671   : > { %1352 = vadd.xlane.f32.xlu0 %v1351_v10 }
 0x687   : > { %1360 = vrot.lane.b32.xlu0 %v3443_v45, %s3133_s0 }
 0x68b   : > { %1473 = vrot.lane.b32.xlu0 %v3443_v45, %s3135_s22 }
 0x6f6   : > { %v1350_v11 = vpop.xlane.xlu0 %1349 }
 0x6f7   : > { %2998 = vrcp.f32 %v1350_v11 }
 0x6fe   : > { %v1353_v12 = vpop.xlane.xlu0 %1352 }
 0x6ff   : > { %3000 = vrcp.f32 %v1353_v12 }
 0x701   : > { %v2999_v13 = vpop.eup %2998 }
 0x702   : > { %v1356_v14 = vmul.f32 %v2999_v13, %v2995_v7  ;;  %v1361_v15 = vpop.permute.xlu0 %1360 }
 0x703   : > { %v1366_v16 = vsel %vm1139_vm5, %v1361_v15, 0 }
 0x704   : > { %2783 = vmatpush3.bf16.msra.mxu1 %v1366_v16  ;;  %v1358_v18 = vpack.c.bf16 %v1356_v14, %v1356_v14 }
 0x705   : > { %2794 = vmatprep.subr.bf16.mxu1 %v3126_v17 }
 0x706   : > { %v1474_v26 = vpop.permute.xlu0 %1473 }
 0x707   : > { %2785 = vmatmul.mubr.msk.bf16.vlgmr.msra.gmra.mrb[8].mxu1 %vm1015_vm3, %v1358_v18 }
 0x708   : > { %2796 = vmatprep.mubr.msk.bf16.mxu1 %vm3127_vm2, %v3126_v17 }
 0x709   : > { %v3001_v20 = vpop.eup %3000 }
 0x70a   : > { %v1357_v21 = vmul.f32 %v3001_v20, %v2997_v9 }
 0x70c   : > { %v1359_v24 = vpack.c.bf16 %v1357_v21, %v1357_v21 }
 0x70d   : > { %2795 = vmatpush3.bf16.xpose.msra.mxu1 %v1481_v23 }
 0x70e   : > { %2791 = vmatmul.mubr.msk.bf16.vlgmr.msra.gmra.mrb[20].mxu0 %vm1015_vm3, %v1359_v24  ;;  %2806 = vmatprep.subr.bf16.mxu1 %v3126_v17 }
 0x70f   : > { %2801 = vmatpush3.bf16.xpose.msra.mxu0 %v1531_v25  ;;  %2802 = vmatprep.mubr.msk.bf16.mxu0 %vm3127_vm2, %v3126_v17 }
 0x710   : > { %2812 = vmatprep.subr.bf16.mxu0 %v3126_v17 }
 0x714   : > { %2797 = vmatmul.mubr.msk.bf16.vlgmr.msra.gmra.mrb[12].mxu1 %vm1015_vm3, %v1474_v26 }
 0x715   : > { %2808 = vmatprep.mubr.msk.bf16.mxu1 %vm3127_vm2, %v3126_v17 }
 0x716   : > { %2803 = vmatmul.mubr.msk.bf16.vlgmr.msra.gmra.mrb[24].mxu0 %vm1015_vm3, %v1524_v27 }
 0x717   : > { %2814 = vmatprep.mubr.msk.bf16.mxu0 %vm3127_vm2, %v3126_v17 }
 0x7da   : > { %v3527_v28 = vpop.f32.mrb[8].mxu1 }
 0x7db   : > { %v2786_v29 = vpop.f32.mrb[9].mxu1 }
 0x7dc   : > { %v1405_v30 = vpop.f32.mrb[10].mxu1 }
 0x7dd   : > { %v2787_v31 = vpop.f32.mrb[11].mxu1 }
 0x7e1   : > { %v3529_v32 = vpop.f32.mrb[20].mxu0 }
 0x7e2   : > { %v2792_v33 = vpop.f32.mrb[21].mxu0 }
 0x7e3   : > { %v1453_v34 = vpop.f32.mrb[22].mxu0 }
 0x7e4   : > { %v2793_v35 = vpop.f32.mrb[23].mxu0 }
 0x7e7   : > { %v1517_v36 = vpop.f32.mrb[12].mxu1 }
 0x7e8   : > { %v1518_v37 = vadd.f32 %v1517_v36, %v3461_v56  ;;  %v2798_v38 = vpop.f32.mrb[13].mxu1 }
 0x7e9   : > { %v1520_v39 = vpop.f32.mrb[14].mxu1  ;;  %v1567_v40 = vpop.f32.mrb[24].mxu0 }
 0x7ea   : > { %v1568_v41 = vadd.f32 %v1567_v40, %v3461_v56  ;;  %v2799_v42 = vpop.f32.mrb[15].mxu1  ;;  %v2804_v43 = vpop.f32.mrb[25].mxu0  ;;  %v1573_v44 = vsel %vm1015_vm3, %v1518_v37, -inf  ;;  %v2681_v40 = vpack.c.bf16 %v3527_v28, %v3527_v28 }
 0x7eb   : > { %1574 = vmax.xlane.f32.xlu0 %v1573_v44  ;;  %v1570_v46 = vpop.f32.mrb[26].mxu0 }
 0x7ec   : > { %v2805_v48 = vpop.f32.mrb[27].mxu0  ;;  %v1576_v49 = vsel %vm1015_vm3, %v1568_v41, -inf }
 0x7ed   : > { %1577 = vmax.xlane.f32.xlu1 %v1576_v49 }
 0x7fe   : > { %1645 = vrot.lane.b32.xlu1 %v3445_v47, %s3136_s21 }
 0x802   : > { %1712 = vrot.lane.b32.xlu1 %v3443_v45, %s3137_s26 }
 0x806   : > { %1762 = vrot.lane.b32.xlu1 %v3445_v47, %s3137_s26  ;;  %s3840_s26 = sld [smem:[#allocation26_spill]] }
 0x80a   : > { %1760 = vrot.lane.b32.xlu1 %v3445_v47, %s3138_s24 }
 0x878   : > { %v1575_v50 = vpop.xlane.xlu0 %1574 }
 0x879   : > { %v1579_v51 = vsub.f32 %v1518_v37, %v1575_v50 }
 0x87a   : > { %v1578_v52 = vpop.xlane.xlu1 %1577 }
 0x87b   : > { %v1581_v53 = vmul.f32 1.442695, %v1579_v51  ;;  %v1580_v54 = vsub.f32 %v1568_v41, %v1578_v52 }
 0x87d   : > { %3002 = vpow2.f32 %v1581_v53  ;;  %v1583_v55 = vmul.f32 1.442695, %v1580_v54 }
 0x87e   : > { %v1646_v57 = vpop.permute.xlu1 %1645 }
 0x87f   : > { %3004 = vpow2.f32 %v1583_v55  ;;  %v1651_v58 = vsel %vm1139_vm5, %v1646_v57, 0 }
 0x880   : > { %2813 = vmatpush3.bf16.msra.mxu0 %v1651_v58 }
 0x881   : > { %2824 = vmatprep.subr.bf16.mxu0 %v3126_v17 }
 0x882   : > { %v1713_v6 = vpop.permute.xlu1 %1712 }
 0x883   : > { %v1718_v12 = vsel %vm1015_vm3, %v1713_v6, 0  ;;  %v2969_v6 = vld [vmem:[%s3350_s30] sm:$0xff]  }
 0x886   : > { %v1763_v11 = vpop.permute.xlu1 %1762 }
 0x887   : > { %v3003_v59 = vpop.eup %3002  ;;  %v1768_v14 = vsel %vm1015_vm3, %v1763_v11, 0 }
 0x888   : > { %v1585_v60 = vsel %vm1015_vm3, %v3003_v59, 0.0 }
 0x889   : > { %v3005_v61 = vpop.eup %3004  ;;  %1586 = vadd.xlane.f32.xlu0 %v1585_v60 }
 0x88a   : > { %v1588_v62 = vsel %vm1015_vm3, %v3005_v61, 0.0  ;;  %v1761_v16 = vpop.permute.xlu1 %1760 }
 0x88d   : > { %1589 = vadd.xlane.f32.xlu0 %v1588_v62 }
 0x8a3   : > { %1597 = vrot.lane.b32.xlu0 %v3443_v45, %s3136_s21 }
 0x8a7   : > { %1710 = vrot.lane.b32.xlu0 %v3443_v45, %s3138_s24  ;;  %s3841_s24 = scalar_lea.vmem %s3840_s26, %s3320_s28 }
 0x916   : > { %v1587_v63 = vpop.xlane.xlu0 %1586 }
 0x917   : > { %3006 = vrcp.f32 %v1587_v63 }
 0x91a   : > { %v1590_v0 = vpop.xlane.xlu0 %1589 }
 0x91b   : > { %3008 = vrcp.f32 %v1590_v0 }
 0x91e   : > { %v1598_v1 = vpop.permute.xlu0 %1597 }
 0x91f   : > { %v1603_v4 = vsel %vm1139_vm5, %v1598_v1, 0 }
 0x920   : > { %2807 = vmatpush3.bf16.msra.mxu1 %v1603_v4 }
 0x921   : > { %v3007_v5 = vpop.eup %3006  ;;  %2818 = vmatprep.subr.bf16.mxu1 %v3126_v17 }
 0x922   : > { %v1593_v7 = vmul.f32 %v3007_v5, %v3003_v59  ;;  %v1711_v15 = vpop.permute.xlu0 %1710 }
 0x924   : > { %v1595_v8 = vpack.c.bf16 %v1593_v7, %v1593_v7  ;;  %v2970_v7 = vld [vmem:[%s3350_s30 + $0x8] sm:$0xff]  }
 0x925   : > { %v3009_v9 = vpop.eup %3008 }
 0x926   : > { %v1594_v10 = vmul.f32 %v3009_v9, %v3005_v61  ;;  %2809 = vmatmul.mubr.msk.bf16.vlgmr.msra.gmra.mrb[16].mxu1 %vm1015_vm3, %v1595_v8 }
 0x927   : > { %2820 = vmatprep.mubr.msk.bf16.mxu1 %vm3127_vm2, %v3126_v17 }
 0x928   : > { %v1596_v13 = vpack.c.bf16 %v1594_v10, %v1594_v10 }
 0x929   : > { %2819 = vmatpush3.bf16.xpose.msra.mxu1 %v1718_v12 }
 0x92a   : > { %2815 = vmatmul.mubr.msk.bf16.vlgmr.msra.gmra.mrb[28].mxu0 %vm1015_vm3, %v1596_v13  ;;  %2830 = vmatprep.subr.bf16.mxu1 %v3126_v17 }
 0x92b   : > { %2825 = vmatpush3.bf16.xpose.msra.mxu0 %v1768_v14  ;;  %2826 = vmatprep.mubr.msk.bf16.mxu0 %vm3127_vm2, %v3126_v17 }
 0x92c   : > { %2836 = vmatprep.subr.bf16.mxu0 %v3126_v17 }
 0x930   : > { %2821 = vmatmul.mubr.msk.bf16.vlgmr.msra.gmra.mrb[20].mxu1 %vm1015_vm3, %v1711_v15 }
 0x931   : > { %2832 = vmatprep.mubr.msk.bf16.mxu1 %vm3127_vm2, %v3126_v17 }
 0x932   : > { %2827 = vmatmul.mubr.msk.bf16.vlgmr.msra.gmra.mrb[32].mxu0 %vm1015_vm3, %v1761_v16 }
 0x933   : > { %2838 = vmatprep.mubr.msk.bf16.mxu0 %vm3127_vm2, %v3126_v17 }
 0x9f9   : > { %v1639_v18 = vpop.f32.mrb[16].mxu1 }
 0x9fa   : > { %v2810_v19 = vpop.f32.mrb[17].mxu1  ;;  %v2683_v57 = vpack.c.bf16 %v1639_v18, %v1639_v18 }
 0x9fb   : > { %v1642_v20 = vpop.f32.mrb[18].mxu1 }
 0x9fc   : > { %v2811_v21 = vpop.f32.mrb[19].mxu1 }
 0x9fd   : > { %v1687_v22 = vpop.f32.mrb[28].mxu0 }
 0x9fe   : > { %v2816_v23 = vpop.f32.mrb[29].mxu0  ;;  %v2684_v41 = vpack.c.bf16 %v1687_v22, %v1687_v22  ;;  %v2648_v22 = vld [vmem:[%s3836_s17] ss:$0 sm:$0xff] }
 0x9ff   : > { %v1690_v24 = vpop.f32.mrb[30].mxu0 }
 0xa00   : > { %v2817_v25 = vpop.f32.mrb[31].mxu0  ;;  %v2649_v24 = vld [vmem:[%s3837_s11] ss:$0 sm:$0xff] }
 0xa03   : > { %v1754_v26 = vpop.f32.mrb[20].mxu1 }
 0xa04   : > { %v1755_v27 = vadd.f32 %v1754_v26, %v3461_v56  ;;  %v2822_v29 = vpop.f32.mrb[21].mxu1 }
 0xa05   : > { %v1757_v30 = vpop.f32.mrb[22].mxu1  ;;  %v1804_v31 = vpop.f32.mrb[32].mxu0 }
 0xa06   : > { %v1805_v33 = vadd.f32 %v1804_v31, %v3461_v56  ;;  %v2823_v34 = vpop.f32.mrb[23].mxu1  ;;  %v2828_v35 = vpop.f32.mrb[33].mxu0  ;;  %v1810_v36 = vsel %vm1015_vm3, %v1755_v27, -inf  ;;  %v2682_v56 = vpack.c.bf16 %v3529_v32, %v3529_v32 }
 0xa07   : > { %1811 = vmax.xlane.f32.xlu0 %v1810_v36  ;;  %v1807_v37 = vpop.f32.mrb[34].mxu0 }
 0xa08   : > { %v2829_v38 = vpop.f32.mrb[35].mxu0  ;;  %v1813_v39 = vsel %vm1015_vm3, %v1805_v33, -inf }
 0xa09   : > { %1814 = vmax.xlane.f32.xlu1 %v1813_v39 }
 0xa1a   : > { %1882 = vrot.lane.b32.xlu1 %v3445_v47, %s3139_s16 }
 0xa1e   : > { %1464 = vrot.lane.b32.xlu1 %v2681_v40, %s3140_s19 }
 0xa22   : > { %1466 = vrot.lane.b32.xlu1 %v2682_v56, %s3140_s19 }
 0xa26   : > { %1703 = vrot.lane.b32.xlu1 %v2684_v41, %s3141_s14 }
 0xa94   : > { %v1812_v42 = vpop.xlane.xlu0 %1811 }
 0xa95   : > { %v1816_v43 = vsub.f32 %v1755_v27, %v1812_v42 }
 0xa96   : > { %v1815_v44 = vpop.xlane.xlu1 %1814 }
 0xa97   : > { %v1818_v46 = vmul.f32 1.442695, %v1816_v43  ;;  %v1817_v48 = vsub.f32 %v1805_v33, %v1815_v44 }
 0xa99   : > { %3010 = vpow2.f32 %v1818_v46  ;;  %v1820_v47 = vmul.f32 1.442695, %v1817_v48  ;;  %v2972_v46 = vld [vmem:[%s3371_s3] sm:$0xff]   ;;  %v2973_v48 = vld [vmem:[%s3371_s3 + $0x8] sm:$0xff]   ;;  %s3839_s3 = scalar_lea.vmem %s3838_s2, %s3320_s28 }
 0xa9a   : > { %v1883_v49 = vpop.permute.xlu1 %1882 }
 0xa9b   : > { %3012 = vpow2.f32 %v1820_v47  ;;  %v1888_v28 = vsel %vm1139_vm5, %v1883_v49, 0 }
 0xa9c   : > { %2837 = vmatpush3.bf16.msra.mxu0 %v1888_v28 }
 0xa9d   : > { %2850 = vmatprep.subr.bf16.mxu0 %v3126_v17 }
 0xa9e   : > { %v1465_v32 = vpop.permute.xlu1 %1464 }
 0xa9f   : > { %1471 = vst.msk [vmem:[#allocation3] sm:$0xf] %vm1470_vm7, %v1465_v32 }
 0xaa2   : > { %v1467_v50 = vpop.permute.xlu1 %1466 }
 0xaa3   : > { %v3011_v51 = vpop.eup %3010  ;;  %1472 = vst.msk [vmem:[#allocation3 + $0x4] sm:$0xf] %vm1470_vm7, %v1467_v50 }
 0xaa4   : > { %v1822_v52 = vsel %vm1015_vm3, %v3011_v51, 0.0 }
 0xaa5   : > { %v3013_v53 = vpop.eup %3012  ;;  %1823 = vadd.xlane.f32.xlu0 %v1822_v52 }
 0xaa6   : > { %v1704_v54 = vpop.permute.xlu1 %1703  ;;  %v1825_v55 = vsel %vm1015_vm3, %v3013_v53, 0.0 }
 0xaa7   : > { %1709 = vst.msk [vmem:[#allocation3 + $0x4] sm:$0xf] %vm1707_vm8, %v1704_v54  ;;  %v2650_v54 = vld [vmem:[%s3839_s3] ss:$0 sm:$0xff] }
 0xaa9   : > { %1826 = vadd.xlane.f32.xlu0 %v1825_v55 }
 0xabf   : > { %1834 = vrot.lane.b32.xlu0 %v3443_v45, %s3139_s16 }
 0xac3   : > { %1701 = vrot.lane.b32.xlu0 %v2683_v57, %s3141_s14 }
 0xb32   : > { %v1824_v58 = vpop.xlane.xlu0 %1823 }
 0xb33   : > { %3014 = vrcp.f32 %v1824_v58 }
 0xb36   : > { %v1827_v59 = vpop.xlane.xlu0 %1826 }
 0xb37   : > { %3016 = vrcp.f32 %v1827_v59  ;;  %v2651_v59 = vld [vmem:[%s3841_s24] ss:$0 sm:$0xff] }
 0xb3a   : > { %v1835_v60 = vpop.permute.xlu0 %1834 }
 0xb3b   : > { %v1840_v61 = vsel %vm1139_vm5, %v1835_v60, 0 }
 0xb3c   : > { %2831 = vmatpush3.bf16.msra.mxu1 %v1840_v61 }
 0xb3d   : > { %v3015_v62 = vpop.eup %3014  ;;  %2842 = vmatprep.subr.bf16.mxu1 %v3126_v17 }
 0xb3e   : > { %v1830_v63 = vmul.f32 %v3015_v62, %v3011_v51  ;;  %v1702_v0 = vpop.permute.xlu0 %1701 }
 0xb3f   : > { %1708 = vst.msk [vmem:[#allocation3] sm:$0xf] %vm1707_vm8, %v1702_v0  ;;  %v2974_v0 = vld [vmem:[%s3385_s9] sm:$0xff]  }
 0xb40   : > { %v1832_v45 = vpack.c.bf16 %v1830_v63, %v1830_v63 }
 0xb41   : > { %v3017_v1 = vpop.eup %3016 }
 0xb42   : > { %v1831_v4 = vmul.f32 %v3017_v1, %v3013_v53  ;;  %2833 = vmatmul.mubr.msk.bf16.vlgmr.msra.gmra.mrb[24].mxu1 %vm1015_vm3, %v1832_v45  ;;  %v2975_v45 = vld [vmem:[%s3385_s9 + $0x8] sm:$0xff]   ;;  %v2976_v1 = vld [vmem:[%s3385_s9 + $0x10] sm:$0xff]  }
 0xb43   : > { %2846 = vmatprep.mubr.msk.bf16.mxu1 %vm3127_vm2, %v3126_v17  ;;  %2843 = vmatpush3.bf16.msra.mxu1 %v2969_v6  ;;  %v2979_v6 = vld [vmem:[%s3385_s9 + $0x28] sm:$0xff]  }
 0xb44   : > { %v1833_v5 = vpack.c.bf16 %v1831_v4, %v1831_v4  ;;  %2844 = vmatprep.subr.bf16.mxu1 %v3126_v17  ;;  %v2977_v4 = vld [vmem:[%s3385_s9 + $0x18] sm:$0xff]  }
 0xb46   : > { %2839 = vmatmul.mubr.msk.bf16.vlgmr.msra.gmra.mrb[36].mxu0 %vm1015_vm3, %v1833_v5  ;;  %v2978_v5 = vld [vmem:[%s3385_s9 + $0x20] sm:$0xff]  }
 0xb47   : > { %2854 = vmatprep.mubr.msk.bf16.mxu0 %vm3127_vm2, %v3126_v17  ;;  %2845 = vmatpush3.bf16.msra.mxu1 %v2970_v7  ;;  %v2980_v7 = vld [vmem:[%s3385_s9 + $0x30] sm:$0xff]  }
 0xb48   : > { %2858 = vmatprep.subr.bf16.mxu1 %v3126_v17  ;;  %2851 = vmatpush3.bf16.msra.mxu0 %v2972_v46 }
 0xb49   : > { %2852 = vmatprep.subr.bf16.mxu0 %v3126_v17 }
 0xb4c   : > { %2853 = vmatpush3.bf16.msra.mxu0 %v2973_v48 }
 0xc15   : > { %v1876_v8 = vpop.f32.mrb[24].mxu1 }
 0xc16   : > { %v2685_v9 = vpack.c.bf16 %v1876_v8, %v1876_v8  ;;  %v2834_v10 = vpop.f32.mrb[25].mxu1  ;;  %v2981_v8 = vld [vmem:[%s3385_s9 + $0x38] sm:$0xff]  }
 0xc17   : > { %v1879_v11 = vpop.f32.mrb[26].mxu1 }
 0xc18   : > { %1938 = vrot.lane.b32.xlu0 %v2685_v9, %s3142_s25  ;;  %v2835_v12 = vpop.f32.mrb[27].mxu1  ;;  %v2655_v9 = vld [vmem:[%s848_s27] ss:$0 sm:$0xff] }
 0xc19   : > { %v1924_v13 = vpop.f32.mrb[36].mxu0  ;;  %v2656_v11 = vld [vmem:[%s851_s15] ss:$0 sm:$0xff] }
 0xc1a   : > { %v2686_v14 = vpack.c.bf16 %v1924_v13, %v1924_v13  ;;  %v2840_v15 = vpop.f32.mrb[37].mxu0 }
 0xc1b   : > { %v1927_v16 = vpop.f32.mrb[38].mxu0 }
 0xc1c   : > { %1940 = vrot.lane.b32.xlu1 %v2686_v14, %s3142_s25  ;;  %v2841_v18 = vpop.f32.mrb[39].mxu0 }
 0xc8a   : > { %v1939_v19 = vpop.permute.xlu0 %1938 }
 0xc8b   : > { %1945 = vst.msk [vmem:[#allocation3] sm:$0xf] %vm1944_vm9, %v1939_v19 }
 0xc8e   : > { %v1941_v20 = vpop.permute.xlu1 %1940 }
 0xc8f   : > { %1946 = vst.msk [vmem:[#allocation3 + $0x4] sm:$0xf] %vm1944_vm9, %v1941_v20 }
 0xc96   : > { %v2971_v21 = vld [vmem:[#allocation3] sm:$0xff]  }
 0xc97   : > { %2847 = vmatmul.mubr.msk.bf16.vlgmr.msra.gmra.mrb[28].mxu1 %vm884_vm1, %v2971_v21 }
 0xc98   : > { %2874 = vmatprep.mubr.msk.bf16.mxu1 %vm3127_vm2, %v3126_v17  ;;  %2859 = vmatpush3.bf16.msra.mxu1 %v2974_v0 }
 0xc99   : > { %2860 = vmatprep.subr.bf16.mxu1 %v3126_v17 }
 0xc9c   : > { %2861 = vmatpush3.bf16.msra.mxu1 %v2975_v45 }
 0xc9d   : > { %2862 = vmatprep.subr.bf16.mxu1 %v3126_v17 }
 0xca0   : > { %2863 = vmatpush3.bf16.msra.mxu1 %v2976_v1 }
 0xca1   : > { %2864 = vmatprep.subr.bf16.mxu1 %v3126_v17 }
 0xca4   : > { %2865 = vmatpush3.bf16.msra.mxu1 %v2977_v4 }
 0xca5   : > { %2866 = vmatprep.subr.bf16.mxu1 %v3126_v17 }
 0xca8   : > { %2867 = vmatpush3.bf16.msra.mxu1 %v2978_v5 }
 0xca9   : > { %2868 = vmatprep.subr.bf16.mxu1 %v3126_v17 }
 0xcac   : > { %2869 = vmatpush3.bf16.msra.mxu1 %v2979_v6 }
 0xcad   : > { %2870 = vmatprep.subr.bf16.mxu1 %v3126_v17 }
 0xcb0   : > { %2871 = vmatpush3.bf16.msra.mxu1 %v2980_v7 }
 0xcb1   : > { %2872 = vmatprep.subr.bf16.mxu1 %v3126_v17 }
 0xcb4   : > { %2873 = vmatpush3.bf16.msra.mxu1 %v2981_v8 }
 0xd6a   : > { %v2007_v23 = vpop.f32.mrb[28].mxu1 }
 0xd6b   : > { %v2021_v25 = vmul.f32 %v2648_v22, %v2007_v23  ;;  %v2848_v26 = vpop.f32.mrb[29].mxu1 }
 0xd6c   : > { %v2010_v27 = vpop.f32.mrb[30].mxu1 }
 0xd6d   : > { %v2030_v29 = vadd.f32 %v2649_v24, %v2021_v25  ;;  %v2022_v30 = vmul.f32 %v2648_v22, %v2010_v27  ;;  %v2849_v31 = vpop.f32.mrb[31].mxu1 }
 0xd6f   : > { %v3609_v33 = vadd.f32 %v2030_v29, %v3398_v2  ;;  %v2031_v34 = vadd.f32 %v2649_v24, %v2022_v30 }
 0xd71   : > { %v3612_v35 = vadd.f32 %v2031_v34, %v3400_v3  ;;  %v2036_v36 = vsel %vm884_vm1, %v3609_v33, 0.0 }
 0xd72   : > { %2037 = vadd.xlane.f32.xlu0 %v2036_v36 }
 0xd73   : > { %v2039_v37 = vsel %vm884_vm1, %v3612_v35, 0.0 }
 0xd74   : > { %2040 = vadd.xlane.f32.xlu1 %v2039_v37 }
 0xdff   : > { %v2038_v38 = vpop.xlane.xlu0 %2037 }
 0xe00   : > { %v2042_v39 = vmul.f32 0.03125, %v2038_v38 }
 0xe01   : > { %v2041_v40 = vpop.xlane.xlu1 %2040 }
 0xe02   : > { %v2044_v2 = vsub.f32 %v3609_v33, %v2042_v39  ;;  %v2043_v56 = vmul.f32 0.03125, %v2041_v40 }
 0xe04   : > { %v2045_v41 = vsub.f32 %v3612_v35, %v2043_v56  ;;  %v2046_v3 = vmul.f32 %v2044_v2, %v2044_v2  ;;  %v2665_v56 = vld [vmem:[%s859_s20] ss:$0 sm:$0xff]  ;;  %s3844_s20 = sld [smem:[#allocation10_spill]] }
 0xe06   : > { %v2048_v42 = vsel %vm884_vm1, %v2046_v3, 0.0  ;;  %v2047_v43 = vmul.f32 %v2045_v41, %v2045_v41  ;;  %v2666_v3 = vld [vmem:[%s862_s10] ss:$0 sm:$0xff] }
 0xe07   : > { %2049 = vadd.xlane.f32.xlu0 %v2048_v42 }
 0xe08   : > { %v2051_v44 = vsel %vm884_vm1, %v2047_v43, 0.0 }
 0xe0a   : > { %p2667_p1 = scmp.ne.s32.totalorder %s3844_s20, 1 }
 0xe0b   : > { %2052 = vadd.xlane.f32.xlu0 %v2051_v44  ;;  %s3845_s1 = sld [smem:[#allocation31_spill]] (!%p2667_p1)  ;;  %s3846_s0 = sld [smem:[#allocation32_spill]] (!%p2667_p1) }
 0xe11   : > { %v2668_v5 = vld [vmem:[%s3845_s1] ss:$0 sm:$0xff] (!%p2667_p1) }
 0xe12   : > { %v2669_v7 = vld [vmem:[%s3846_s0] ss:$0 sm:$0xff] (!%p2667_p1) }
 0xe94   : > { %v2050_v47 = vpop.xlane.xlu0 %2049 }
 0xe95   : > { %v2054_v49 = vmul.f32 0.03125, %v2050_v47 }
 0xe97   : > { %v2056_v28 = vadd.f32 1e-05, %v2054_v49 }
 0xe98   : > { %v2053_v32 = vpop.xlane.xlu0 %2052 }
 0xe99   : > { %3018 = vrsqrt.f32 %v2056_v28  ;;  %v2055_v50 = vmul.f32 0.03125, %v2053_v32 }
 0xe9b   : > { %v2057_v51 = vadd.f32 1e-05, %v2055_v50 }
 0xe9d   : > { %3020 = vrsqrt.f32 %v2057_v51 }
 0xea3   : > { %v3019_v52 = vpop.eup %3018 }
 0xea4   : > { %v2060_v53 = vmul.f32 %v3019_v52, %v2044_v2 }
 0xea6   : > { %v2068_v57 = vmul.f32 %v2650_v54, %v2060_v53 }
 0xea7   : > { %v3021_v55 = vpop.eup %3020 }
 0xea8   : > { %v2061_v58 = vmul.f32 %v3021_v55, %v2045_v41  ;;  %v2076_v61 = vadd.f32 %v2651_v59, %v2068_v57 }
 0xeaa   : > { %v2069_v60 = vmul.f32 %v2650_v54, %v2061_v58 }
 0xeac   : > { %v2077_v62 = vadd.f32 %v2651_v59, %v2069_v60 }
 0xeae   : > { %v2078_v63 = vpack.c.bf16 %v2077_v62, %v2076_v61 }
 0xeb0   : > { %2855 = vmatmul.mubr.msk.bf16.vlgmr.msra.gmra.mrb[40].mxu0 %vm884_vm1, %v2078_v63 }
 0xf83   : > { %v2132_v10 = vpop.f32.mrb[40].mxu0 }
 0xf84   : > { %v2146_v12 = vmul.f32 %v2655_v9, %v2132_v10  ;;  %v2856_v13 = vpop.f32.mrb[41].mxu0 }
 0xf85   : > { %v2135_v14 = vpop.f32.mrb[42].mxu0 }
 0xf86   : > { %v2155_v15 = vadd.f32 %v2656_v11, %v2146_v12  ;;  %v2147_v16 = vmul.f32 %v2655_v9, %v2135_v14  ;;  %v2857_v18 = vpop.f32.mrb[43].mxu0 }
 0xf88   : > { %v2157_v19 = vmul.f32 %v2155_v15, %v2155_v15  ;;  %v2156_v17 = vadd.f32 %v2656_v11, %v2147_v16 }
 0xf8a   : > { %v2159_v20 = vmul.f32 %v2157_v19, %v2155_v15  ;;  %v2158_v21 = vmul.f32 %v2156_v17, %v2156_v17 }
 0xf8c   : > { %v2161_v22 = vmul.f32 0.044715, %v2159_v20  ;;  %v2160_v23 = vmul.f32 %v2158_v21, %v2156_v17 }
 0xf8e   : > { %v2163_v24 = vadd.f32 %v2161_v22, %v2155_v15  ;;  %v2162_v25 = vmul.f32 0.044715, %v2160_v23 }
 0xf90   : > { %v2165_v26 = vmul.f32 0.7978846, %v2163_v24  ;;  %v2164_v27 = vadd.f32 %v2162_v25, %v2156_v17 }
 0xf92   : > { %3022 = vtanh.f32 %v2165_v26  ;;  %v2166_v29 = vmul.f32 0.7978846, %v2164_v27 }
 0xf94   : > { %3024 = vtanh.f32 %v2166_v29 }
 0xf9c   : > { %v3023_v30 = vpop.eup %3022 }
 0xf9d   : > { %v2169_v31 = vadd.f32 1.0, %v3023_v30 }
 0xf9e   : > { %v3025_v34 = vpop.eup %3024 }
 0xf9f   : > { %v2170_v36 = vadd.f32 1.0, %v3025_v34  ;;  %v2171_v37 = vmul.f32 0.5, %v2169_v31 }
 0xfa1   : > { %v2172_v38 = vmul.f32 0.5, %v2170_v36  ;;  %v2173_v39 = vmul.f32 %v2171_v37, %v2155_v15 }
 0xfa3   : > { %v2174_v40 = vmul.f32 %v2172_v38, %v2156_v17 }
 0xfa5   : > { %v2175_v2 = vpack.c.bf16 %v2174_v40, %v2173_v39 }
 0xfa7   : > { %2875 = vmatmul.mubr.bf16.vlgmr.msra.gmra.mrb[32].mxu1 %v2175_v2 }
0x107a   : > { %v2274_v41 = vpop.f32.mrb[32].mxu1 }
0x107b   : > { %v2288_v42 = vmul.f32 %v2665_v56, %v2274_v41  ;;  %v2876_v43 = vpop.f32.mrb[33].mxu1 }
0x107c   : > { %v2277_v44 = vpop.f32.mrb[34].mxu1 }
0x107d   : > { %v2297_v46 = vadd.f32 %v2666_v3, %v2288_v42  ;;  %v2289_v48 = vmul.f32 %v2665_v56, %v2277_v44  ;;  %v2877_v47 = vpop.f32.mrb[35].mxu1  ;;  %2306 = sbr.rel (%p2667_p1) target bundleno = 4543 (0x11bf), region = 104 }
0x107f   : > { %v2299_v49 = vadd.f32 %v2297_v46, %v3609_v33  ;;  %v2298_v28 = vadd.f32 %v2666_v3, %v2289_v48 }
0x1081   : > { %2301 = vst.msk [vmem:[#allocation2] sm:$0xff] %vm884_vm1, %v2299_v49  ;;  %v2300_v32 = vadd.f32 %v2298_v28, %v3612_v35  ;;  %v2309_v50 = vsel (!%p2667_p1), %vm884_vm1, %v2299_v49, 0.0 }
0x1082   : > { %2310 = vadd.xlane.f32.xlu0 (!%p2667_p1), %v2309_v50 }
0x1083   : > { %2302 = vst.msk [vmem:[#allocation2 + $0x8] sm:$0xff] %vm884_vm1, %v2300_v32  ;;  %v2312_v51 = vsel (!%p2667_p1), %vm884_vm1, %v2300_v32, 0.0 }
0x1086   : > { %2313 = vadd.xlane.f32.xlu0 %v2312_v51 }
0x110f   : > { %v2311_v52 = vpop.xlane.xlu0 %2310 }
0x1110   : > { %v2315_v53 = vmul.f32 0.03125, %v2311_v52 }
0x1112   : > { %v2317_v54 = vsub.f32 %v2299_v49, %v2315_v53 }
0x1113   : > { %v2314_v33 = vpop.xlane.xlu0 %2313 }
0x1114   : > { %v2316_v55 = vmul.f32 0.03125, %v2314_v33  ;;  %v2319_v57 = vmul.f32 %v2317_v54, %v2317_v54 }
0x1116   : > { %v2318_v58 = vsub.f32 %v2300_v32, %v2316_v55  ;;  %v2321_v35 = vsel %vm884_vm1, %v2319_v57, 0.0 }
0x1117   : > { %2322 = vadd.xlane.f32.xlu1 %v2321_v35 }
0x1118   : > { %v2320_v59 = vmul.f32 %v2318_v58, %v2318_v58 }
0x111a   : > { %v2324_v60 = vsel %vm884_vm1, %v2320_v59, 0.0 }
0x111b   : > { %2325 = vadd.xlane.f32.xlu1 %v2324_v60 }
0x11a4   : > { %v2323_v61 = vpop.xlane.xlu1 %2322 }
0x11a5   : > { %v2327_v62 = vmul.f32 0.03125, %v2323_v61 }
0x11a7   : > { %v2329_v63 = vadd.f32 1e-05, %v2327_v62 }
0x11a8   : > { %v2326_v0 = vpop.xlane.xlu1 %2325 }
0x11a9   : > { %3026 = vrsqrt.f32 %v2329_v63  ;;  %v2328_v45 = vmul.f32 0.03125, %v2326_v0 }
0x11ab   : > { %v2330_v1 = vadd.f32 1e-05, %v2328_v45 }
0x11ad   : > { %3028 = vrsqrt.f32 %v2330_v1 }
0x11b3   : > { %v3027_v4 = vpop.eup %3026 }
0x11b4   : > { %v2333_v6 = vmul.f32 %v3027_v4, %v2317_v54 }
0x11b6   : > { %v2341_v8 = vmul.f32 %v2668_v5, %v2333_v6 }
0x11b7   : > { %v3029_v9 = vpop.eup %3028 }
0x11b8   : > { %v2349_v10 = vadd.f32 %v2669_v7, %v2341_v8  ;;  %v2334_v11 = vmul.f32 %v3029_v9, %v2318_v58 }
0x11ba   : > { %2351 = vst.msk [vmem:[%s3395_s6] sm:$0xff] %vm884_vm1, %v2349_v10  ;;  %v2342_v12 = vmul.f32 %v2668_v5, %v2334_v11 }
0x11bc   : > { %v2350_v13 = vadd.f32 %v2669_v7, %v2342_v12 }
0x11be   : > { %2352 = vst.msk [vmem:[%s3395_s6 + $0x8] sm:$0xff] %vm884_vm1, %v2350_v13 }
0x11bf PF: > { %s3847_s2 = sld [smem:[#allocation11_spill]]  ;;  %s3848_s3 = sld [smem:[#allocation8_spill]] }
0x11c0   : > { %s3850_s16 = sld [smem:[#allocation33_spill]]  ;;  %s2367_s25 = sshll.u32 %s3395_s6, 4  ;;  %s3697_s25 = int_to_ptr.vmem [resolvable:$true] %s2367_s25 }
0x11c1   : > { %s3030_s27 = scalar_lea.vmem %s3697_s25, 256  ;;  %s3143_s15 = smov [#allocation4]  }
0x11c2   : > { %p3031_p2 = scmp.ne.s32.totalorder %s3697_s25, %s3030_s27  ;;  %s3034_s29 = sshll.u32 %s3143_s15, 4  ;;  %s3035_s29 = int_to_ptr.vmem [resolvable:$false] %s3034_s29 }
0x11c3   : > { %s3036_s17 = scalar_lea.vmem %s3035_s29, 512  ;;  %p3037_p6 = scmp.lt.s32.totalorder %s3697_s25, %s3035_s29 }
0x11c4   : > { %p3032_p4 = pnand %p3031_p2, %p3294_p3  ;;  %p3038_p7 = scmp.lt.s32.totalorder %s3036_s17, %s3030_s27 }
0x11c5   : > { %s2687_s21 = sshll.u32 %s3847_s2, 8  ;;  %s3851_s30 = sand.u32 1, %s3848_s3  }
0x11c6   : > { %s3694_s14 = scalar_lea.hbm %s3850_s16, %s2687_s21  ;;  %s3701_s9 = scalar_lea.sflag [#allocation5], %s3851_s30 }
0x11c7   : > { %p3033_p5 = pneg %p3032_p4  ;;  %p3039_p8 = por %p3038_p7, %p3037_p6 }
0x11c9   : > { %p3040_p10 = pnand %p3039_p8, %p3033_p5 }
0x11cb   : > { %3043 = shalt.err (!%p3040_p10)
}
0x11cc   : > { %s3044_s6 = scalar_lea.hbm %s3694_s14, 256  ;;  %s3048_s10 = scalar_lea.hbm %s3850_s16, 512 }
0x11cd   : > { %p3045_p11 = scmp.ne.s32.totalorder %s3694_s14, %s3044_s6  ;;  %p3049_p0 = scmp.lt.u32.totalorder %s3694_s14, %s3850_s16 }
0x11ce   : > { %p3050_p1 = scmp.lt.u32.totalorder %s3048_s10, %s3044_s6  ;;  %p3052_p4 = scmp.lt.u32.totalorder %s3044_s6, %s3694_s14 }
0x11cf   : > { %p3046_p12 = pnand %p3045_p11, %p3294_p3 }
0x11d0   : > { %p3051_p2 = por %p3050_p1, %p3049_p0 }
0x11d1   : > { %p3047_p13 = pneg %p3046_p12 }
0x11d2   : > { %p3053_p5 = por %p3052_p4, %p3051_p2 }
0x11d4   : > { %p3054_p6 = pnand %p3053_p5, %p3047_p13 }
0x11d6   : > { %3057 = shalt.err (!%p3054_p6)
}
0x11d7   : > { %s3144_s11 = smov 128  }
0x11d8   : > { %2878 = dma.vmem_to_hbm [thread:$0]  (%p3294_p3), %s3697_s25, 256, %s3694_s14, %s3701_s9, %s3144_s11, %s3144_s11, %s3140_s19  }
0x11d9 PF: > { %s3852_s18 = sld [smem:[#allocation14_spill]]  ;;  %s3853_s0 = sld [smem:[#allocation7_spill]] }
0x11df   : > { %p2884_p7 = scmp.ge.s32.totalorder %s3852_s18, 2  ;;  %s2382_s3 = sand.u32 1, %s3853_s0  }
0x11e0   : > { %s2383_s21 = scalar_lea.sflag [#allocation5], %s2382_s3 }
0x11e1   : > { %p2881_p8 = pnand %p2884_p7, %p3304_p9 }
0x11e3   : > { %3091 = dma.done.wait (!%p2881_p8), %s2383_s21, 256  }
0x11e4   : > { %3093 = vsyncadd (!%p2881_p8), %s2383_s21, 4294967040  ;;  %s32_s23 = sadd.s32 1, %s3852_s18   ;;  %s3855_s0 = sld [smem:[#allocation8_spill]] }
0x11e5   : > { %p29_p10 = scmp.ge.s32.totalorder %s32_s23, 6   ;;  %s3856_s30 = sld [smem:[#allocation9_spill]] }
0x11e6   : > { %s3857_s20 = sld [smem:[#allocation19_spill]]  ;;  %s3858_s21 = sld [smem:[#allocation12_spill]] }
0x11e7   : > { %s3859_s1 = sld [smem:[#allocation13_spill]]  ;;  %s3860_s22 = sld [smem:[#allocation15_spill]] }
0x11e8   : > { %s3861_s2 = sld [smem:[#allocation17_spill]]  ;;  %31 = sbr.rel (!%p29_p10) target bundleno = 20 (0x14), region = 187 }
0x11ef   :  { %2388 = vsyncpa [#allocation5], 1 }
0x11f0   :  { %2390 = vsyncpa [#allocation5 + $0x1], 1 }

</bundles_post_ra>
